<compile_context>
chip_gen: v6e
topology: v6e:2x2x1
jax: 0.10.0
libtpu: 0.0.40
codegen_flags: <defaults>
</compile_context>

<pallas_src>
import jax
import jax.numpy as jnp
import numpy as np
from jax import lax
from jax.experimental import pallas as pl
from jax.experimental.pallas import tpu as pltpu

# ----- model config (small shapes consistent with LanguageModel('LSTM', ...)) -----
EMSIZE = 32      # emsize
NHIDDEN = 32     # nhidden
NTOKENS = 256    # ntokens
NLAYERS = 2      # nlayers
BATCH = 2
SEQLEN = 8
# dropout=0.0, tied=False


# ----------------------------- fused Pallas kernel --------------------------------
def _make_fused_kernel(nlayers, B, T, H, E, V):
    """Fused forward kernel: one-hot embedding + nlayers LSTM + decoder, all in VMEM."""

    def kernel(*refs):
        # ref layout: [ids(T*B,1), emb, (w_ih, w_hh, b)*L, w_dec, b_dec, out]
        ids_ref = refs[0]
        emb_ref = refs[1]
        layer_refs = refs[2:2 + 3 * nlayers]
        wdec_ref = refs[2 + 3 * nlayers]
        bdec_ref = refs[3 + 3 * nlayers]
        out_ref = refs[4 + 3 * nlayers]

        # ---- embedding gather as one MXU matmul: onehot(T*B, V) @ emb(V, E) ----
        ids = ids_ref[...]                                            # (T*B, 1) int32, time-major
        vocab_iota = lax.broadcasted_iota(jnp.int32, (T * B, V), 1)
        onehot = (vocab_iota == ids).astype(jnp.float32)
        x = jnp.dot(onehot, emb_ref[...],
                    preferred_element_type=jnp.float32)               # (T*B, E) time-major

        # lane mask selecting the tanh gate (g) columns [2H, 3H) of the fused 4H block
        gate_lane = lax.broadcasted_iota(jnp.int32, (B, 4 * H), 1)
        is_g = jnp.logical_and(gate_lane >= 2 * H, gate_lane < 3 * H)

        # ---- stacked LSTM layers (state kept in vregs; no VMEM round-trips) ----
        for l in range(nlayers):
            w_ih = layer_refs[3 * l][...]                             # (Ein, 4H)
            w_hh = layer_refs[3 * l + 1][...]                         # (H, 4H)
            bias = layer_refs[3 * l + 2][...]                         # (1, 4H) = b_ih + b_hh

            # hoisted, time-independent input projection (+ bias, broadcast once)
            g_in = jnp.dot(x, w_ih, preferred_element_type=jnp.float32) + bias   # (T*B, 4H)

            h = jnp.zeros((B, H), jnp.float32)
            c = jnp.zeros((B, H), jnp.float32)
            hs = []
            for t in range(T):                                        # static unroll (T=8)
                # single lane-dense (B, 4H=128) recurrent matmul per step
                pre = g_in[t * B:(t + 1) * B, :] + jnp.dot(
                    h, w_hh, preferred_element_type=jnp.float32)      # (B, 4H)
                # 2 EUP pushes over the full vreg, g-gate lanes selected by mask
                sig = jax.nn.sigmoid(pre)
                th = jnp.tanh(pre)
                act = jnp.where(is_g, th, sig)
                i_g = act[:, 0 * H:1 * H]
                f_g = act[:, 1 * H:2 * H]
                g_g = act[:, 2 * H:3 * H]
                o_g = act[:, 3 * H:4 * H]
                c = f_g * c + i_g * g_g
                h = o_g * jnp.tanh(c)
                hs.append(h)
            x = jnp.concatenate(hs, axis=0)                           # (T*B, H) time-major

        # ---- dropout (eval) == identity; decoder: one lane-dense (T*B, V) matmul ----
        out_ref[...] = (jnp.dot(x, wdec_ref[...], preferred_element_type=jnp.float32)
                        + bdec_ref[...])

    return kernel


# ------------------------------ forward wrapper -----------------------------------
def language_model_forward(params, token_ids):
    """teacher_forcing=True forward: (B, T) int tokens -> (B, T, NTOKENS) logits."""
    B, T = token_ids.shape
    nlayers = len(params["lstm_layers"])
    H = NHIDDEN
    E = EMSIZE
    V = NTOKENS

    # token ids in time-major row order (row = t*B + b), as a tiny 2D VMEM input
    ids_tm = token_ids.astype(jnp.int32).T.reshape(T * B, 1)

    dense_inputs = [ids_tm, params["embedding"]]
    for (w_ih, w_hh, b) in params["lstm_layers"]:
        dense_inputs += [w_ih, w_hh, b]
    dense_inputs += [params["w_dec"], params["b_dec"]]

    kernel = _make_fused_kernel(nlayers, B, T, H, E, V)

    logits_tm = pl.pallas_call(
        kernel,
        out_shape=jax.ShapeDtypeStruct((T * B, V), jnp.float32),
        grid=(1,),                                                   # single fused invocation
        in_specs=[pl.BlockSpec(arr.shape, lambda i: (0, 0)) for arr in dense_inputs],
        out_specs=pl.BlockSpec((T * B, V), lambda i: (0, 0)),
        compiler_params=pltpu.CompilerParams(
            dimension_semantics=("arbitrary",)),
    )(*dense_inputs)

    # time-major (T*B, V) -> (B, T, V); 16 KiB transpose outside the kernel is negligible
    return jnp.transpose(logits_tm.reshape(T, B, V), (1, 0, 2))


# ------------------------------ parameter init -------------------------------------
def init_params(key):
    initrange = 0.05
    keys = jax.random.split(key, 2 + 4 * NLAYERS)
    # embedding.weight.uniform_(-0.05, 0.05)
    embedding = jax.random.uniform(keys[0], (NTOKENS, EMSIZE), jnp.float32,
                                   -initrange, initrange)
    # decoder (not tied): weight uniform(-0.05, 0.05), bias zero. Stored transposed (H, V).
    w_dec = jax.random.uniform(keys[1], (NHIDDEN, NTOKENS), jnp.float32,
                               -initrange, initrange)
    b_dec = jnp.zeros((1, NTOKENS), jnp.float32)
    # LSTM default init: uniform(-1/sqrt(H), 1/sqrt(H)); weights stored transposed,
    # biases combined (b_ih + b_hh). Gate order i, f, g, o (PyTorch).
    stdv = 1.0 / np.sqrt(NHIDDEN)
    lstm_layers = []
    for l in range(NLAYERS):
        in_size = EMSIZE if l == 0 else NHIDDEN
        k = keys[2 + 4 * l: 2 + 4 * (l + 1)]
        w_ih = jax.random.uniform(k[0], (in_size, 4 * NHIDDEN), jnp.float32, -stdv, stdv)
        w_hh = jax.random.uniform(k[1], (NHIDDEN, 4 * NHIDDEN), jnp.float32, -stdv, stdv)
        b_ih = jax.random.uniform(k[2], (4 * NHIDDEN,), jnp.float32, -stdv, stdv)
        b_hh = jax.random.uniform(k[3], (4 * NHIDDEN,), jnp.float32, -stdv, stdv)
        lstm_layers.append((w_ih, w_hh, (b_ih + b_hh)[None, :]))
    return {"embedding": embedding, "lstm_layers": lstm_layers,
            "w_dec": w_dec, "b_dec": b_dec}


# ------------------------------ pure-JAX reference ---------------------------------
def reference_forward(params, token_ids):
    B, T = token_ids.shape
    H = NHIDDEN
    emb = jnp.take(params["embedding"], token_ids, axis=0)
    x = jnp.transpose(emb, (1, 0, 2)).astype(jnp.float32)      # (T, B, E)
    for (w_ih, w_hh, b) in params["lstm_layers"]:
        def cell(carry, xt, w_ih=w_ih, w_hh=w_hh, b=b):
            h, c = carry
            gates = xt @ w_ih + h @ w_hh + b[0]
            i = jax.nn.sigmoid(gates[:, :H])
            f = jax.nn.sigmoid(gates[:, H:2 * H])
            g = jnp.tanh(gates[:, 2 * H:3 * H])
            o = jax.nn.sigmoid(gates[:, 3 * H:])
            c_new = f * c + i * g
            h_new = o * jnp.tanh(c_new)
            return (h_new, c_new), h_new
        (_, _), hs = lax.scan(cell, (jnp.zeros((B, H)), jnp.zeros((B, H))), x)
        x = hs
    h_flat = jnp.transpose(x, (1, 0, 2)).reshape(B * T, H)
    logits = h_flat @ params["w_dec"] + params["b_dec"][0]
    return logits.reshape(B, T, NTOKENS)


if __name__ == "__main__":
    key = jax.random.PRNGKey(0)
    pkey, dkey = jax.random.split(key)
    params = init_params(pkey)
    token_ids = jax.random.randint(dkey, (BATCH, SEQLEN), 0, NTOKENS, dtype=jnp.int32)

    logits = jax.jit(language_model_forward)(params, token_ids)
    logits = jax.block_until_ready(logits)
    assert logits.shape == (BATCH, SEQLEN, NTOKENS)

    ref = reference_forward(params, token_ids)
    np.testing.assert_allclose(np.asarray(logits), np.asarray(ref), rtol=2e-2, atol=2e-2)
    print("KERNEL_OK")
</pallas_src>

<mosaic_0001>
module attributes {stable_mosaic.version = 11 : i64} {
  func.func @kernel(%arg0: i32, %arg1: memref<16x1xi32, #tpu.memory_space<vmem>>, %arg2: memref<256x32xf32, #tpu.memory_space<vmem>>, %arg3: memref<32x128xf32, #tpu.memory_space<vmem>>, %arg4: memref<32x128xf32, #tpu.memory_space<vmem>>, %arg5: memref<1x128xf32, #tpu.memory_space<vmem>>, %arg6: memref<32x128xf32, #tpu.memory_space<vmem>>, %arg7: memref<32x128xf32, #tpu.memory_space<vmem>>, %arg8: memref<1x128xf32, #tpu.memory_space<vmem>>, %arg9: memref<32x256xf32, #tpu.memory_space<vmem>>, %arg10: memref<1x256xf32, #tpu.memory_space<vmem>>, %arg11: memref<16x256xf32, #tpu.memory_space<vmem>>) attributes {dimension_semantics = [#tpu.dimension_semantics<arbitrary>], iteration_bounds = array<i64: 1>, scalar_prefetch = 0 : i64, scratch_operands = 0 : i64, tpu.core_type = #tpu.core_type<tc>, window_params = [{pipeline_mode = #tpu.pipeline_mode<synchronous>, transform_indices = @transform_0, window_bounds = array<i64: 16, 1>}, {pipeline_mode = #tpu.pipeline_mode<synchronous>, transform_indices = @transform_1, window_bounds = array<i64: 256, 32>}, {pipeline_mode = #tpu.pipeline_mode<synchronous>, transform_indices = @transform_2, window_bounds = array<i64: 32, 128>}, {pipeline_mode = #tpu.pipeline_mode<synchronous>, transform_indices = @transform_3, window_bounds = array<i64: 32, 128>}, {pipeline_mode = #tpu.pipeline_mode<synchronous>, transform_indices = @transform_4, window_bounds = array<i64: 1, 128>}, {pipeline_mode = #tpu.pipeline_mode<synchronous>, transform_indices = @transform_5, window_bounds = array<i64: 32, 128>}, {pipeline_mode = #tpu.pipeline_mode<synchronous>, transform_indices = @transform_6, window_bounds = array<i64: 32, 128>}, {pipeline_mode = #tpu.pipeline_mode<synchronous>, transform_indices = @transform_7, window_bounds = array<i64: 1, 128>}, {pipeline_mode = #tpu.pipeline_mode<synchronous>, transform_indices = @transform_8, window_bounds = array<i64: 32, 256>}, {pipeline_mode = #tpu.pipeline_mode<synchronous>, transform_indices = @transform_9, window_bounds = array<i64: 1, 256>}, {pipeline_mode = #tpu.pipeline_mode<synchronous>, transform_indices = @transform_10, window_bounds = array<i64: 16, 256>}]} {
    %c0 = arith.constant 0 : index
    %c0_0 = arith.constant 0 : index
    %0 = vector.load %arg1[%c0, %c0_0] : memref<16x1xi32, #tpu.memory_space<vmem>>, vector<16x1xi32>
    %1 = tpu.iota {dimensions = array<i32: 1>} : vector<16x256xi32>
    %2 = vector.broadcast %0 : vector<16x1xi32> to vector<16x256xi32>
    %3 = arith.cmpi eq, %1, %2 : vector<16x256xi32>
    %4 = arith.extui %3 : vector<16x256xi1> to vector<16x256xi32>
    %5 = arith.sitofp %4 : vector<16x256xi32> to vector<16x256xf32>
    %c0_1 = arith.constant 0 : index
    %c0_2 = arith.constant 0 : index
    %6 = vector.load %arg2[%c0_1, %c0_2] : memref<256x32xf32, #tpu.memory_space<vmem>>, vector<256x32xf32>
    %cst = arith.constant dense<0.000000e+00> : vector<16x32xf32>
    %7 = tpu.matmul %5, %6, %cst {dimension_numbers = #tpu.dot_dimension_numbers<[1], [0], [0], [1], [0, 0, 1, 1], [], []>} : vector<16x256xf32>, vector<256x32xf32>, vector<16x32xf32> -> vector<16x32xf32>
    %8 = tpu.iota {dimensions = array<i32: 1>} : vector<2x128xi32>
    %c64_i32 = arith.constant 64 : i32
    %9 = vector.broadcast %c64_i32 : i32 to vector<2x128xi32>
    %10 = arith.cmpi sge, %8, %9 : vector<2x128xi32>
    %c96_i32 = arith.constant 96 : i32
    %11 = vector.broadcast %c96_i32 : i32 to vector<2x128xi32>
    %12 = arith.cmpi slt, %8, %11 : vector<2x128xi32>
    %13 = arith.andi %10, %12 : vector<2x128xi1>
    %c0_3 = arith.constant 0 : index
    %c0_4 = arith.constant 0 : index
    %14 = vector.load %arg3[%c0_3, %c0_4] : memref<32x128xf32, #tpu.memory_space<vmem>>, vector<32x128xf32>
    %c0_5 = arith.constant 0 : index
    %c0_6 = arith.constant 0 : index
    %15 = vector.load %arg4[%c0_5, %c0_6] : memref<32x128xf32, #tpu.memory_space<vmem>>, vector<32x128xf32>
    %c0_7 = arith.constant 0 : index
    %c0_8 = arith.constant 0 : index
    %16 = vector.load %arg5[%c0_7, %c0_8] : memref<1x128xf32, #tpu.memory_space<vmem>>, vector<1x128xf32>
    %cst_9 = arith.constant dense<0.000000e+00> : vector<16x128xf32>
    %17 = tpu.matmul %7, %14, %cst_9 {dimension_numbers = #tpu.dot_dimension_numbers<[1], [0], [0], [1], [0, 0, 1, 1], [], []>} : vector<16x32xf32>, vector<32x128xf32>, vector<16x128xf32> -> vector<16x128xf32>
    %18 = vector.broadcast %16 : vector<1x128xf32> to vector<16x128xf32>
    %19 = arith.addf %17, %18 : vector<16x128xf32>
    %cst_10 = arith.constant 0.000000e+00 : f32
    %20 = vector.broadcast %cst_10 : f32 to vector<2x32xf32>
    %cst_11 = arith.constant 0.000000e+00 : f32
    %21 = vector.broadcast %cst_11 : f32 to vector<2x32xf32>
    %22 = vector.extract_strided_slice %19 {offsets = [0, 0], sizes = [2, 128], strides = [1, 1]} : vector<16x128xf32> to vector<2x128xf32>
    %cst_12 = arith.constant dense<0.000000e+00> : vector<2x128xf32>
    %23 = tpu.matmul %20, %15, %cst_12 {dimension_numbers = #tpu.dot_dimension_numbers<[1], [0], [0], [1], [0, 0, 1, 1], [], []>} : vector<2x32xf32>, vector<32x128xf32>, vector<2x128xf32> -> vector<2x128xf32>
    %24 = arith.addf %22, %23 : vector<2x128xf32>
    %25 = arith.negf %24 : vector<2x128xf32>
    %26 = math.exp %25 : vector<2x128xf32>
    %cst_13 = arith.constant 1.000000e+00 : f32
    %27 = vector.broadcast %cst_13 : f32 to vector<2x128xf32>
    %28 = arith.addf %27, %26 : vector<2x128xf32>
    %29 = arith.divf %27, %28 : vector<2x128xf32>
    %30 = math.tanh %24 : vector<2x128xf32>
    %31 = arith.select %13, %30, %29 : vector<2x128xi1>, vector<2x128xf32>
    %32 = vector.extract_strided_slice %31 {offsets = [0, 0], sizes = [2, 32], strides = [1, 1]} : vector<2x128xf32> to vector<2x32xf32>
    %33 = vector.extract_strided_slice %31 {offsets = [0, 32], sizes = [2, 32], strides = [1, 1]} : vector<2x128xf32> to vector<2x32xf32>
    %34 = vector.extract_strided_slice %31 {offsets = [0, 64], sizes = [2, 32], strides = [1, 1]} : vector<2x128xf32> to vector<2x32xf32>
    %35 = vector.extract_strided_slice %31 {offsets = [0, 96], sizes = [2, 32], strides = [1, 1]} : vector<2x128xf32> to vector<2x32xf32>
    %36 = arith.mulf %33, %21 : vector<2x32xf32>
    %37 = arith.mulf %32, %34 : vector<2x32xf32>
    %38 = arith.addf %36, %37 : vector<2x32xf32>
    %39 = math.tanh %38 : vector<2x32xf32>
    %40 = arith.mulf %35, %39 : vector<2x32xf32>
    %41 = vector.extract_strided_slice %19 {offsets = [2, 0], sizes = [2, 128], strides = [1, 1]} : vector<16x128xf32> to vector<2x128xf32>
    %cst_14 = arith.constant dense<0.000000e+00> : vector<2x128xf32>
    %42 = tpu.matmul %40, %15, %cst_14 {dimension_numbers = #tpu.dot_dimension_numbers<[1], [0], [0], [1], [0, 0, 1, 1], [], []>} : vector<2x32xf32>, vector<32x128xf32>, vector<2x128xf32> -> vector<2x128xf32>
    %43 = arith.addf %41, %42 : vector<2x128xf32>
    %44 = arith.negf %43 : vector<2x128xf32>
    %45 = math.exp %44 : vector<2x128xf32>
    %cst_15 = arith.constant 1.000000e+00 : f32
    %46 = vector.broadcast %cst_15 : f32 to vector<2x128xf32>
    %47 = arith.addf %46, %45 : vector<2x128xf32>
    %48 = arith.divf %46, %47 : vector<2x128xf32>
    %49 = math.tanh %43 : vector<2x128xf32>
    %50 = arith.select %13, %49, %48 : vector<2x128xi1>, vector<2x128xf32>
    %51 = vector.extract_strided_slice %50 {offsets = [0, 0], sizes = [2, 32], strides = [1, 1]} : vector<2x128xf32> to vector<2x32xf32>
    %52 = vector.extract_strided_slice %50 {offsets = [0, 32], sizes = [2, 32], strides = [1, 1]} : vector<2x128xf32> to vector<2x32xf32>
    %53 = vector.extract_strided_slice %50 {offsets = [0, 64], sizes = [2, 32], strides = [1, 1]} : vector<2x128xf32> to vector<2x32xf32>
    %54 = vector.extract_strided_slice %50 {offsets = [0, 96], sizes = [2, 32], strides = [1, 1]} : vector<2x128xf32> to vector<2x32xf32>
    %55 = arith.mulf %52, %38 : vector<2x32xf32>
    %56 = arith.mulf %51, %53 : vector<2x32xf32>
    %57 = arith.addf %55, %56 : vector<2x32xf32>
    %58 = math.tanh %57 : vector<2x32xf32>
    %59 = arith.mulf %54, %58 : vector<2x32xf32>
    %60 = vector.extract_strided_slice %19 {offsets = [4, 0], sizes = [2, 128], strides = [1, 1]} : vector<16x128xf32> to vector<2x128xf32>
    %cst_16 = arith.constant dense<0.000000e+00> : vector<2x128xf32>
    %61 = tpu.matmul %59, %15, %cst_16 {dimension_numbers = #tpu.dot_dimension_numbers<[1], [0], [0], [1], [0, 0, 1, 1], [], []>} : vector<2x32xf32>, vector<32x128xf32>, vector<2x128xf32> -> vector<2x128xf32>
    %62 = arith.addf %60, %61 : vector<2x128xf32>
    %63 = arith.negf %62 : vector<2x128xf32>
    %64 = math.exp %63 : vector<2x128xf32>
    %cst_17 = arith.constant 1.000000e+00 : f32
    %65 = vector.broadcast %cst_17 : f32 to vector<2x128xf32>
    %66 = arith.addf %65, %64 : vector<2x128xf32>
    %67 = arith.divf %65, %66 : vector<2x128xf32>
    %68 = math.tanh %62 : vector<2x128xf32>
    %69 = arith.select %13, %68, %67 : vector<2x128xi1>, vector<2x128xf32>
    %70 = vector.extract_strided_slice %69 {offsets = [0, 0], sizes = [2, 32], strides = [1, 1]} : vector<2x128xf32> to vector<2x32xf32>
    %71 = vector.extract_strided_slice %69 {offsets = [0, 32], sizes = [2, 32], strides = [1, 1]} : vector<2x128xf32> to vector<2x32xf32>
    %72 = vector.extract_strided_slice %69 {offsets = [0, 64], sizes = [2, 32], strides = [1, 1]} : vector<2x128xf32> to vector<2x32xf32>
    %73 = vector.extract_strided_slice %69 {offsets = [0, 96], sizes = [2, 32], strides = [1, 1]} : vector<2x128xf32> to vector<2x32xf32>
    %74 = arith.mulf %71, %57 : vector<2x32xf32>
    %75 = arith.mulf %70, %72 : vector<2x32xf32>
    %76 = arith.addf %74, %75 : vector<2x32xf32>
    %77 = math.tanh %76 : vector<2x32xf32>
    %78 = arith.mulf %73, %77 : vector<2x32xf32>
    %79 = vector.extract_strided_slice %19 {offsets = [6, 0], sizes = [2, 128], strides = [1, 1]} : vector<16x128xf32> to vector<2x128xf32>
    %cst_18 = arith.constant dense<0.000000e+00> : vector<2x128xf32>
    %80 = tpu.matmul %78, %15, %cst_18 {dimension_numbers = #tpu.dot_dimension_numbers<[1], [0], [0], [1], [0, 0, 1, 1], [], []>} : vector<2x32xf32>, vector<32x128xf32>, vector<2x128xf32> -> vector<2x128xf32>
    %81 = arith.addf %79, %80 : vector<2x128xf32>
    %82 = arith.negf %81 : vector<2x128xf32>
    %83 = math.exp %82 : vector<2x128xf32>
    %cst_19 = arith.constant 1.000000e+00 : f32
    %84 = vector.broadcast %cst_19 : f32 to vector<2x128xf32>
    %85 = arith.addf %84, %83 : vector<2x128xf32>
    %86 = arith.divf %84, %85 : vector<2x128xf32>
    %87 = math.tanh %81 : vector<2x128xf32>
    %88 = arith.select %13, %87, %86 : vector<2x128xi1>, vector<2x128xf32>
    %89 = vector.extract_strided_slice %88 {offsets = [0, 0], sizes = [2, 32], strides = [1, 1]} : vector<2x128xf32> to vector<2x32xf32>
    %90 = vector.extract_strided_slice %88 {offsets = [0, 32], sizes = [2, 32], strides = [1, 1]} : vector<2x128xf32> to vector<2x32xf32>
    %91 = vector.extract_strided_slice %88 {offsets = [0, 64], sizes = [2, 32], strides = [1, 1]} : vector<2x128xf32> to vector<2x32xf32>
    %92 = vector.extract_strided_slice %88 {offsets = [0, 96], sizes = [2, 32], strides = [1, 1]} : vector<2x128xf32> to vector<2x32xf32>
    %93 = arith.mulf %90, %76 : vector<2x32xf32>
    %94 = arith.mulf %89, %91 : vector<2x32xf32>
    %95 = arith.addf %93, %94 : vector<2x32xf32>
    %96 = math.tanh %95 : vector<2x32xf32>
    %97 = arith.mulf %92, %96 : vector<2x32xf32>
    %98 = vector.extract_strided_slice %19 {offsets = [8, 0], sizes = [2, 128], strides = [1, 1]} : vector<16x128xf32> to vector<2x128xf32>
    %cst_20 = arith.constant dense<0.000000e+00> : vector<2x128xf32>
    %99 = tpu.matmul %97, %15, %cst_20 {dimension_numbers = #tpu.dot_dimension_numbers<[1], [0], [0], [1], [0, 0, 1, 1], [], []>} : vector<2x32xf32>, vector<32x128xf32>, vector<2x128xf32> -> vector<2x128xf32>
    %100 = arith.addf %98, %99 : vector<2x128xf32>
    %101 = arith.negf %100 : vector<2x128xf32>
    %102 = math.exp %101 : vector<2x128xf32>
    %cst_21 = arith.constant 1.000000e+00 : f32
    %103 = vector.broadcast %cst_21 : f32 to vector<2x128xf32>
    %104 = arith.addf %103, %102 : vector<2x128xf32>
    %105 = arith.divf %103, %104 : vector<2x128xf32>
    %106 = math.tanh %100 : vector<2x128xf32>
    %107 = arith.select %13, %106, %105 : vector<2x128xi1>, vector<2x128xf32>
    %108 = vector.extract_strided_slice %107 {offsets = [0, 0], sizes = [2, 32], strides = [1, 1]} : vector<2x128xf32> to vector<2x32xf32>
    %109 = vector.extract_strided_slice %107 {offsets = [0, 32], sizes = [2, 32], strides = [1, 1]} : vector<2x128xf32> to vector<2x32xf32>
    %110 = vector.extract_strided_slice %107 {offsets = [0, 64], sizes = [2, 32], strides = [1, 1]} : vector<2x128xf32> to vector<2x32xf32>
    %111 = vector.extract_strided_slice %107 {offsets = [0, 96], sizes = [2, 32], strides = [1, 1]} : vector<2x128xf32> to vector<2x32xf32>
    %112 = arith.mulf %109, %95 : vector<2x32xf32>
    %113 = arith.mulf %108, %110 : vector<2x32xf32>
    %114 = arith.addf %112, %113 : vector<2x32xf32>
    %115 = math.tanh %114 : vector<2x32xf32>
    %116 = arith.mulf %111, %115 : vector<2x32xf32>
    %117 = vector.extract_strided_slice %19 {offsets = [10, 0], sizes = [2, 128], strides = [1, 1]} : vector<16x128xf32> to vector<2x128xf32>
    %cst_22 = arith.constant dense<0.000000e+00> : vector<2x128xf32>
    %118 = tpu.matmul %116, %15, %cst_22 {dimension_numbers = #tpu.dot_dimension_numbers<[1], [0], [0], [1], [0, 0, 1, 1], [], []>} : vector<2x32xf32>, vector<32x128xf32>, vector<2x128xf32> -> vector<2x128xf32>
    %119 = arith.addf %117, %118 : vector<2x128xf32>
    %120 = arith.negf %119 : vector<2x128xf32>
    %121 = math.exp %120 : vector<2x128xf32>
    %cst_23 = arith.constant 1.000000e+00 : f32
    %122 = vector.broadcast %cst_23 : f32 to vector<2x128xf32>
    %123 = arith.addf %122, %121 : vector<2x128xf32>
    %124 = arith.divf %122, %123 : vector<2x128xf32>
    %125 = math.tanh %119 : vector<2x128xf32>
    %126 = arith.select %13, %125, %124 : vector<2x128xi1>, vector<2x128xf32>
    %127 = vector.extract_strided_slice %126 {offsets = [0, 0], sizes = [2, 32], strides = [1, 1]} : vector<2x128xf32> to vector<2x32xf32>
    %128 = vector.extract_strided_slice %126 {offsets = [0, 32], sizes = [2, 32], strides = [1, 1]} : vector<2x128xf32> to vector<2x32xf32>
    %129 = vector.extract_strided_slice %126 {offsets = [0, 64], sizes = [2, 32], strides = [1, 1]} : vector<2x128xf32> to vector<2x32xf32>
    %130 = vector.extract_strided_slice %126 {offsets = [0, 96], sizes = [2, 32], strides = [1, 1]} : vector<2x128xf32> to vector<2x32xf32>
    %131 = arith.mulf %128, %114 : vector<2x32xf32>
    %132 = arith.mulf %127, %129 : vector<2x32xf32>
    %133 = arith.addf %131, %132 : vector<2x32xf32>
    %134 = math.tanh %133 : vector<2x32xf32>
    %135 = arith.mulf %130, %134 : vector<2x32xf32>
    %136 = vector.extract_strided_slice %19 {offsets = [12, 0], sizes = [2, 128], strides = [1, 1]} : vector<16x128xf32> to vector<2x128xf32>
    %cst_24 = arith.constant dense<0.000000e+00> : vector<2x128xf32>
    %137 = tpu.matmul %135, %15, %cst_24 {dimension_numbers = #tpu.dot_dimension_numbers<[1], [0], [0], [1], [0, 0, 1, 1], [], []>} : vector<2x32xf32>, vector<32x128xf32>, vector<2x128xf32> -> vector<2x128xf32>
    %138 = arith.addf %136, %137 : vector<2x128xf32>
    %139 = arith.negf %138 : vector<2x128xf32>
    %140 = math.exp %139 : vector<2x128xf32>
    %cst_25 = arith.constant 1.000000e+00 : f32
    %141 = vector.broadcast %cst_25 : f32 to vector<2x128xf32>
    %142 = arith.addf %141, %140 : vector<2x128xf32>
    %143 = arith.divf %141, %142 : vector<2x128xf32>
    %144 = math.tanh %138 : vector<2x128xf32>
    %145 = arith.select %13, %144, %143 : vector<2x128xi1>, vector<2x128xf32>
    %146 = vector.extract_strided_slice %145 {offsets = [0, 0], sizes = [2, 32], strides = [1, 1]} : vector<2x128xf32> to vector<2x32xf32>
    %147 = vector.extract_strided_slice %145 {offsets = [0, 32], sizes = [2, 32], strides = [1, 1]} : vector<2x128xf32> to vector<2x32xf32>
    %148 = vector.extract_strided_slice %145 {offsets = [0, 64], sizes = [2, 32], strides = [1, 1]} : vector<2x128xf32> to vector<2x32xf32>
    %149 = vector.extract_strided_slice %145 {offsets = [0, 96], sizes = [2, 32], strides = [1, 1]} : vector<2x128xf32> to vector<2x32xf32>
    %150 = arith.mulf %147, %133 : vector<2x32xf32>
    %151 = arith.mulf %146, %148 : vector<2x32xf32>
    %152 = arith.addf %150, %151 : vector<2x32xf32>
    %153 = math.tanh %152 : vector<2x32xf32>
    %154 = arith.mulf %149, %153 : vector<2x32xf32>
    %155 = vector.extract_strided_slice %19 {offsets = [14, 0], sizes = [2, 128], strides = [1, 1]} : vector<16x128xf32> to vector<2x128xf32>
    %cst_26 = arith.constant dense<0.000000e+00> : vector<2x128xf32>
    %156 = tpu.matmul %154, %15, %cst_26 {dimension_numbers = #tpu.dot_dimension_numbers<[1], [0], [0], [1], [0, 0, 1, 1], [], []>} : vector<2x32xf32>, vector<32x128xf32>, vector<2x128xf32> -> vector<2x128xf32>
    %157 = arith.addf %155, %156 : vector<2x128xf32>
    %158 = arith.negf %157 : vector<2x128xf32>
    %159 = math.exp %158 : vector<2x128xf32>
    %cst_27 = arith.constant 1.000000e+00 : f32
    %160 = vector.broadcast %cst_27 : f32 to vector<2x128xf32>
    %161 = arith.addf %160, %159 : vector<2x128xf32>
    %162 = arith.divf %160, %161 : vector<2x128xf32>
    %163 = math.tanh %157 : vector<2x128xf32>
    %164 = arith.select %13, %163, %162 : vector<2x128xi1>, vector<2x128xf32>
    %165 = vector.extract_strided_slice %164 {offsets = [0, 0], sizes = [2, 32], strides = [1, 1]} : vector<2x128xf32> to vector<2x32xf32>
    %166 = vector.extract_strided_slice %164 {offsets = [0, 32], sizes = [2, 32], strides = [1, 1]} : vector<2x128xf32> to vector<2x32xf32>
    %167 = vector.extract_strided_slice %164 {offsets = [0, 64], sizes = [2, 32], strides = [1, 1]} : vector<2x128xf32> to vector<2x32xf32>
    %168 = vector.extract_strided_slice %164 {offsets = [0, 96], sizes = [2, 32], strides = [1, 1]} : vector<2x128xf32> to vector<2x32xf32>
    %169 = arith.mulf %166, %152 : vector<2x32xf32>
    %170 = arith.mulf %165, %167 : vector<2x32xf32>
    %171 = arith.addf %169, %170 : vector<2x32xf32>
    %172 = math.tanh %171 : vector<2x32xf32>
    %173 = arith.mulf %168, %172 : vector<2x32xf32>
    %174 = tpu.concatenate %40, %59, %78, %97, %116, %135, %154, %173 in 0 : vector<2x32xf32>, vector<2x32xf32>, vector<2x32xf32>, vector<2x32xf32>, vector<2x32xf32>, vector<2x32xf32>, vector<2x32xf32>, vector<2x32xf32> -> vector<16x32xf32>
    %c0_28 = arith.constant 0 : index
    %c0_29 = arith.constant 0 : index
    %175 = vector.load %arg6[%c0_28, %c0_29] : memref<32x128xf32, #tpu.memory_space<vmem>>, vector<32x128xf32>
    %c0_30 = arith.constant 0 : index
    %c0_31 = arith.constant 0 : index
    %176 = vector.load %arg7[%c0_30, %c0_31] : memref<32x128xf32, #tpu.memory_space<vmem>>, vector<32x128xf32>
    %c0_32 = arith.constant 0 : index
    %c0_33 = arith.constant 0 : index
    %177 = vector.load %arg8[%c0_32, %c0_33] : memref<1x128xf32, #tpu.memory_space<vmem>>, vector<1x128xf32>
    %cst_34 = arith.constant dense<0.000000e+00> : vector<16x128xf32>
    %178 = tpu.matmul %174, %175, %cst_34 {dimension_numbers = #tpu.dot_dimension_numbers<[1], [0], [0], [1], [0, 0, 1, 1], [], []>} : vector<16x32xf32>, vector<32x128xf32>, vector<16x128xf32> -> vector<16x128xf32>
    %179 = vector.broadcast %177 : vector<1x128xf32> to vector<16x128xf32>
    %180 = arith.addf %178, %179 : vector<16x128xf32>
    %cst_35 = arith.constant 0.000000e+00 : f32
    %181 = vector.broadcast %cst_35 : f32 to vector<2x32xf32>
    %cst_36 = arith.constant 0.000000e+00 : f32
    %182 = vector.broadcast %cst_36 : f32 to vector<2x32xf32>
    %183 = vector.extract_strided_slice %180 {offsets = [0, 0], sizes = [2, 128], strides = [1, 1]} : vector<16x128xf32> to vector<2x128xf32>
    %cst_37 = arith.constant dense<0.000000e+00> : vector<2x128xf32>
    %184 = tpu.matmul %181, %176, %cst_37 {dimension_numbers = #tpu.dot_dimension_numbers<[1], [0], [0], [1], [0, 0, 1, 1], [], []>} : vector<2x32xf32>, vector<32x128xf32>, vector<2x128xf32> -> vector<2x128xf32>
    %185 = arith.addf %183, %184 : vector<2x128xf32>
    %186 = arith.negf %185 : vector<2x128xf32>
    %187 = math.exp %186 : vector<2x128xf32>
    %cst_38 = arith.constant 1.000000e+00 : f32
    %188 = vector.broadcast %cst_38 : f32 to vector<2x128xf32>
    %189 = arith.addf %188, %187 : vector<2x128xf32>
    %190 = arith.divf %188, %189 : vector<2x128xf32>
    %191 = math.tanh %185 : vector<2x128xf32>
    %192 = arith.select %13, %191, %190 : vector<2x128xi1>, vector<2x128xf32>
    %193 = vector.extract_strided_slice %192 {offsets = [0, 0], sizes = [2, 32], strides = [1, 1]} : vector<2x128xf32> to vector<2x32xf32>
    %194 = vector.extract_strided_slice %192 {offsets = [0, 32], sizes = [2, 32], strides = [1, 1]} : vector<2x128xf32> to vector<2x32xf32>
    %195 = vector.extract_strided_slice %192 {offsets = [0, 64], sizes = [2, 32], strides = [1, 1]} : vector<2x128xf32> to vector<2x32xf32>
    %196 = vector.extract_strided_slice %192 {offsets = [0, 96], sizes = [2, 32], strides = [1, 1]} : vector<2x128xf32> to vector<2x32xf32>
    %197 = arith.mulf %194, %182 : vector<2x32xf32>
    %198 = arith.mulf %193, %195 : vector<2x32xf32>
    %199 = arith.addf %197, %198 : vector<2x32xf32>
    %200 = math.tanh %199 : vector<2x32xf32>
    %201 = arith.mulf %196, %200 : vector<2x32xf32>
    %202 = vector.extract_strided_slice %180 {offsets = [2, 0], sizes = [2, 128], strides = [1, 1]} : vector<16x128xf32> to vector<2x128xf32>
    %cst_39 = arith.constant dense<0.000000e+00> : vector<2x128xf32>
    %203 = tpu.matmul %201, %176, %cst_39 {dimension_numbers = #tpu.dot_dimension_numbers<[1], [0], [0], [1], [0, 0, 1, 1], [], []>} : vector<2x32xf32>, vector<32x128xf32>, vector<2x128xf32> -> vector<2x128xf32>
    %204 = arith.addf %202, %203 : vector<2x128xf32>
    %205 = arith.negf %204 : vector<2x128xf32>
    %206 = math.exp %205 : vector<2x128xf32>
    %cst_40 = arith.constant 1.000000e+00 : f32
    %207 = vector.broadcast %cst_40 : f32 to vector<2x128xf32>
    %208 = arith.addf %207, %206 : vector<2x128xf32>
    %209 = arith.divf %207, %208 : vector<2x128xf32>
    %210 = math.tanh %204 : vector<2x128xf32>
    %211 = arith.select %13, %210, %209 : vector<2x128xi1>, vector<2x128xf32>
    %212 = vector.extract_strided_slice %211 {offsets = [0, 0], sizes = [2, 32], strides = [1, 1]} : vector<2x128xf32> to vector<2x32xf32>
    %213 = vector.extract_strided_slice %211 {offsets = [0, 32], sizes = [2, 32], strides = [1, 1]} : vector<2x128xf32> to vector<2x32xf32>
    %214 = vector.extract_strided_slice %211 {offsets = [0, 64], sizes = [2, 32], strides = [1, 1]} : vector<2x128xf32> to vector<2x32xf32>
    %215 = vector.extract_strided_slice %211 {offsets = [0, 96], sizes = [2, 32], strides = [1, 1]} : vector<2x128xf32> to vector<2x32xf32>
    %216 = arith.mulf %213, %199 : vector<2x32xf32>
    %217 = arith.mulf %212, %214 : vector<2x32xf32>
    %218 = arith.addf %216, %217 : vector<2x32xf32>
    %219 = math.tanh %218 : vector<2x32xf32>
    %220 = arith.mulf %215, %219 : vector<2x32xf32>
    %221 = vector.extract_strided_slice %180 {offsets = [4, 0], sizes = [2, 128], strides = [1, 1]} : vector<16x128xf32> to vector<2x128xf32>
    %cst_41 = arith.constant dense<0.000000e+00> : vector<2x128xf32>
    %222 = tpu.matmul %220, %176, %cst_41 {dimension_numbers = #tpu.dot_dimension_numbers<[1], [0], [0], [1], [0, 0, 1, 1], [], []>} : vector<2x32xf32>, vector<32x128xf32>, vector<2x128xf32> -> vector<2x128xf32>
    %223 = arith.addf %221, %222 : vector<2x128xf32>
    %224 = arith.negf %223 : vector<2x128xf32>
    %225 = math.exp %224 : vector<2x128xf32>
    %cst_42 = arith.constant 1.000000e+00 : f32
    %226 = vector.broadcast %cst_42 : f32 to vector<2x128xf32>
    %227 = arith.addf %226, %225 : vector<2x128xf32>
    %228 = arith.divf %226, %227 : vector<2x128xf32>
    %229 = math.tanh %223 : vector<2x128xf32>
    %230 = arith.select %13, %229, %228 : vector<2x128xi1>, vector<2x128xf32>
    %231 = vector.extract_strided_slice %230 {offsets = [0, 0], sizes = [2, 32], strides = [1, 1]} : vector<2x128xf32> to vector<2x32xf32>
    %232 = vector.extract_strided_slice %230 {offsets = [0, 32], sizes = [2, 32], strides = [1, 1]} : vector<2x128xf32> to vector<2x32xf32>
    %233 = vector.extract_strided_slice %230 {offsets = [0, 64], sizes = [2, 32], strides = [1, 1]} : vector<2x128xf32> to vector<2x32xf32>
    %234 = vector.extract_strided_slice %230 {offsets = [0, 96], sizes = [2, 32], strides = [1, 1]} : vector<2x128xf32> to vector<2x32xf32>
    %235 = arith.mulf %232, %218 : vector<2x32xf32>
    %236 = arith.mulf %231, %233 : vector<2x32xf32>
    %237 = arith.addf %235, %236 : vector<2x32xf32>
    %238 = math.tanh %237 : vector<2x32xf32>
    %239 = arith.mulf %234, %238 : vector<2x32xf32>
    %240 = vector.extract_strided_slice %180 {offsets = [6, 0], sizes = [2, 128], strides = [1, 1]} : vector<16x128xf32> to vector<2x128xf32>
    %cst_43 = arith.constant dense<0.000000e+00> : vector<2x128xf32>
    %241 = tpu.matmul %239, %176, %cst_43 {dimension_numbers = #tpu.dot_dimension_numbers<[1], [0], [0], [1], [0, 0, 1, 1], [], []>} : vector<2x32xf32>, vector<32x128xf32>, vector<2x128xf32> -> vector<2x128xf32>
    %242 = arith.addf %240, %241 : vector<2x128xf32>
    %243 = arith.negf %242 : vector<2x128xf32>
    %244 = math.exp %243 : vector<2x128xf32>
    %cst_44 = arith.constant 1.000000e+00 : f32
    %245 = vector.broadcast %cst_44 : f32 to vector<2x128xf32>
    %246 = arith.addf %245, %244 : vector<2x128xf32>
    %247 = arith.divf %245, %246 : vector<2x128xf32>
    %248 = math.tanh %242 : vector<2x128xf32>
    %249 = arith.select %13, %248, %247 : vector<2x128xi1>, vector<2x128xf32>
    %250 = vector.extract_strided_slice %249 {offsets = [0, 0], sizes = [2, 32], strides = [1, 1]} : vector<2x128xf32> to vector<2x32xf32>
    %251 = vector.extract_strided_slice %249 {offsets = [0, 32], sizes = [2, 32], strides = [1, 1]} : vector<2x128xf32> to vector<2x32xf32>
    %252 = vector.extract_strided_slice %249 {offsets = [0, 64], sizes = [2, 32], strides = [1, 1]} : vector<2x128xf32> to vector<2x32xf32>
    %253 = vector.extract_strided_slice %249 {offsets = [0, 96], sizes = [2, 32], strides = [1, 1]} : vector<2x128xf32> to vector<2x32xf32>
    %254 = arith.mulf %251, %237 : vector<2x32xf32>
    %255 = arith.mulf %250, %252 : vector<2x32xf32>
    %256 = arith.addf %254, %255 : vector<2x32xf32>
    %257 = math.tanh %256 : vector<2x32xf32>
    %258 = arith.mulf %253, %257 : vector<2x32xf32>
    %259 = vector.extract_strided_slice %180 {offsets = [8, 0], sizes = [2, 128], strides = [1, 1]} : vector<16x128xf32> to vector<2x128xf32>
    %cst_45 = arith.constant dense<0.000000e+00> : vector<2x128xf32>
    %260 = tpu.matmul %258, %176, %cst_45 {dimension_numbers = #tpu.dot_dimension_numbers<[1], [0], [0], [1], [0, 0, 1, 1], [], []>} : vector<2x32xf32>, vector<32x128xf32>, vector<2x128xf32> -> vector<2x128xf32>
    %261 = arith.addf %259, %260 : vector<2x128xf32>
    %262 = arith.negf %261 : vector<2x128xf32>
    %263 = math.exp %262 : vector<2x128xf32>
    %cst_46 = arith.constant 1.000000e+00 : f32
    %264 = vector.broadcast %cst_46 : f32 to vector<2x128xf32>
    %265 = arith.addf %264, %263 : vector<2x128xf32>
    %266 = arith.divf %264, %265 : vector<2x128xf32>
    %267 = math.tanh %261 : vector<2x128xf32>
    %268 = arith.select %13, %267, %266 : vector<2x128xi1>, vector<2x128xf32>
    %269 = vector.extract_strided_slice %268 {offsets = [0, 0], sizes = [2, 32], strides = [1, 1]} : vector<2x128xf32> to vector<2x32xf32>
    %270 = vector.extract_strided_slice %268 {offsets = [0, 32], sizes = [2, 32], strides = [1, 1]} : vector<2x128xf32> to vector<2x32xf32>
    %271 = vector.extract_strided_slice %268 {offsets = [0, 64], sizes = [2, 32], strides = [1, 1]} : vector<2x128xf32> to vector<2x32xf32>
    %272 = vector.extract_strided_slice %268 {offsets = [0, 96], sizes = [2, 32], strides = [1, 1]} : vector<2x128xf32> to vector<2x32xf32>
    %273 = arith.mulf %270, %256 : vector<2x32xf32>
    %274 = arith.mulf %269, %271 : vector<2x32xf32>
    %275 = arith.addf %273, %274 : vector<2x32xf32>
    %276 = math.tanh %275 : vector<2x32xf32>
    %277 = arith.mulf %272, %276 : vector<2x32xf32>
    %278 = vector.extract_strided_slice %180 {offsets = [10, 0], sizes = [2, 128], strides = [1, 1]} : vector<16x128xf32> to vector<2x128xf32>
    %cst_47 = arith.constant dense<0.000000e+00> : vector<2x128xf32>
    %279 = tpu.matmul %277, %176, %cst_47 {dimension_numbers = #tpu.dot_dimension_numbers<[1], [0], [0], [1], [0, 0, 1, 1], [], []>} : vector<2x32xf32>, vector<32x128xf32>, vector<2x128xf32> -> vector<2x128xf32>
    %280 = arith.addf %278, %279 : vector<2x128xf32>
    %281 = arith.negf %280 : vector<2x128xf32>
    %282 = math.exp %281 : vector<2x128xf32>
    %cst_48 = arith.constant 1.000000e+00 : f32
    %283 = vector.broadcast %cst_48 : f32 to vector<2x128xf32>
    %284 = arith.addf %283, %282 : vector<2x128xf32>
    %285 = arith.divf %283, %284 : vector<2x128xf32>
    %286 = math.tanh %280 : vector<2x128xf32>
    %287 = arith.select %13, %286, %285 : vector<2x128xi1>, vector<2x128xf32>
    %288 = vector.extract_strided_slice %287 {offsets = [0, 0], sizes = [2, 32], strides = [1, 1]} : vector<2x128xf32> to vector<2x32xf32>
    %289 = vector.extract_strided_slice %287 {offsets = [0, 32], sizes = [2, 32], strides = [1, 1]} : vector<2x128xf32> to vector<2x32xf32>
    %290 = vector.extract_strided_slice %287 {offsets = [0, 64], sizes = [2, 32], strides = [1, 1]} : vector<2x128xf32> to vector<2x32xf32>
    %291 = vector.extract_strided_slice %287 {offsets = [0, 96], sizes = [2, 32], strides = [1, 1]} : vector<2x128xf32> to vector<2x32xf32>
    %292 = arith.mulf %289, %275 : vector<2x32xf32>
    %293 = arith.mulf %288, %290 : vector<2x32xf32>
    %294 = arith.addf %292, %293 : vector<2x32xf32>
    %295 = math.tanh %294 : vector<2x32xf32>
    %296 = arith.mulf %291, %295 : vector<2x32xf32>
    %297 = vector.extract_strided_slice %180 {offsets = [12, 0], sizes = [2, 128], strides = [1, 1]} : vector<16x128xf32> to vector<2x128xf32>
    %cst_49 = arith.constant dense<0.000000e+00> : vector<2x128xf32>
    %298 = tpu.matmul %296, %176, %cst_49 {dimension_numbers = #tpu.dot_dimension_numbers<[1], [0], [0], [1], [0, 0, 1, 1], [], []>} : vector<2x32xf32>, vector<32x128xf32>, vector<2x128xf32> -> vector<2x128xf32>
    %299 = arith.addf %297, %298 : vector<2x128xf32>
    %300 = arith.negf %299 : vector<2x128xf32>
    %301 = math.exp %300 : vector<2x128xf32>
    %cst_50 = arith.constant 1.000000e+00 : f32
    %302 = vector.broadcast %cst_50 : f32 to vector<2x128xf32>
    %303 = arith.addf %302, %301 : vector<2x128xf32>
    %304 = arith.divf %302, %303 : vector<2x128xf32>
    %305 = math.tanh %299 : vector<2x128xf32>
    %306 = arith.select %13, %305, %304 : vector<2x128xi1>, vector<2x128xf32>
    %307 = vector.extract_strided_slice %306 {offsets = [0, 0], sizes = [2, 32], strides = [1, 1]} : vector<2x128xf32> to vector<2x32xf32>
    %308 = vector.extract_strided_slice %306 {offsets = [0, 32], sizes = [2, 32], strides = [1, 1]} : vector<2x128xf32> to vector<2x32xf32>
    %309 = vector.extract_strided_slice %306 {offsets = [0, 64], sizes = [2, 32], strides = [1, 1]} : vector<2x128xf32> to vector<2x32xf32>
    %310 = vector.extract_strided_slice %306 {offsets = [0, 96], sizes = [2, 32], strides = [1, 1]} : vector<2x128xf32> to vector<2x32xf32>
    %311 = arith.mulf %308, %294 : vector<2x32xf32>
    %312 = arith.mulf %307, %309 : vector<2x32xf32>
    %313 = arith.addf %311, %312 : vector<2x32xf32>
    %314 = math.tanh %313 : vector<2x32xf32>
    %315 = arith.mulf %310, %314 : vector<2x32xf32>
    %316 = vector.extract_strided_slice %180 {offsets = [14, 0], sizes = [2, 128], strides = [1, 1]} : vector<16x128xf32> to vector<2x128xf32>
    %cst_51 = arith.constant dense<0.000000e+00> : vector<2x128xf32>
    %317 = tpu.matmul %315, %176, %cst_51 {dimension_numbers = #tpu.dot_dimension_numbers<[1], [0], [0], [1], [0, 0, 1, 1], [], []>} : vector<2x32xf32>, vector<32x128xf32>, vector<2x128xf32> -> vector<2x128xf32>
    %318 = arith.addf %316, %317 : vector<2x128xf32>
    %319 = arith.negf %318 : vector<2x128xf32>
    %320 = math.exp %319 : vector<2x128xf32>
    %cst_52 = arith.constant 1.000000e+00 : f32
    %321 = vector.broadcast %cst_52 : f32 to vector<2x128xf32>
    %322 = arith.addf %321, %320 : vector<2x128xf32>
    %323 = arith.divf %321, %322 : vector<2x128xf32>
    %324 = math.tanh %318 : vector<2x128xf32>
    %325 = arith.select %13, %324, %323 : vector<2x128xi1>, vector<2x128xf32>
    %326 = vector.extract_strided_slice %325 {offsets = [0, 0], sizes = [2, 32], strides = [1, 1]} : vector<2x128xf32> to vector<2x32xf32>
    %327 = vector.extract_strided_slice %325 {offsets = [0, 32], sizes = [2, 32], strides = [1, 1]} : vector<2x128xf32> to vector<2x32xf32>
    %328 = vector.extract_strided_slice %325 {offsets = [0, 64], sizes = [2, 32], strides = [1, 1]} : vector<2x128xf32> to vector<2x32xf32>
    %329 = vector.extract_strided_slice %325 {offsets = [0, 96], sizes = [2, 32], strides = [1, 1]} : vector<2x128xf32> to vector<2x32xf32>
    %330 = arith.mulf %327, %313 : vector<2x32xf32>
    %331 = arith.mulf %326, %328 : vector<2x32xf32>
    %332 = arith.addf %330, %331 : vector<2x32xf32>
    %333 = math.tanh %332 : vector<2x32xf32>
    %334 = arith.mulf %329, %333 : vector<2x32xf32>
    %335 = tpu.concatenate %201, %220, %239, %258, %277, %296, %315, %334 in 0 : vector<2x32xf32>, vector<2x32xf32>, vector<2x32xf32>, vector<2x32xf32>, vector<2x32xf32>, vector<2x32xf32>, vector<2x32xf32>, vector<2x32xf32> -> vector<16x32xf32>
    %c0_53 = arith.constant 0 : index
    %c0_54 = arith.constant 0 : index
    %336 = vector.load %arg9[%c0_53, %c0_54] : memref<32x256xf32, #tpu.memory_space<vmem>>, vector<32x256xf32>
    %cst_55 = arith.constant dense<0.000000e+00> : vector<16x256xf32>
    %337 = tpu.matmul %335, %336, %cst_55 {dimension_numbers = #tpu.dot_dimension_numbers<[1], [0], [0], [1], [0, 0, 1, 1], [], []>} : vector<16x32xf32>, vector<32x256xf32>, vector<16x256xf32> -> vector<16x256xf32>
    %c0_56 = arith.constant 0 : index
    %c0_57 = arith.constant 0 : index
    %338 = vector.load %arg10[%c0_56, %c0_57] : memref<1x256xf32, #tpu.memory_space<vmem>>, vector<1x256xf32>
    %339 = vector.broadcast %338 : vector<1x256xf32> to vector<16x256xf32>
    %340 = arith.addf %337, %339 : vector<16x256xf32>
    %c0_58 = arith.constant 0 : index
    %c0_59 = arith.constant 0 : index
    %341 = vector.load %arg11[%c0_58, %c0_59] : memref<16x256xf32, #tpu.memory_space<vmem>>, vector<16x256xf32>
    tpu.vector_store %arg11[%c0_58, %c0_59], %340 {strides = array<i32>} : memref<16x256xf32, #tpu.memory_space<vmem>>, vector<16x256xf32>,
    return
  }
  func.func @transform_0(%arg0: i32) -> (i32, i32) {
    %c0_i32 = arith.constant 0 : i32
    %c0_i32_0 = arith.constant 0 : i32
    %c0_i32_1 = arith.constant 0 : i32
    return %c0_i32, %c0_i32_0 : i32, i32
  }
  func.func @transform_1(%arg0: i32) -> (i32, i32) {
    %c0_i32 = arith.constant 0 : i32
    %c0_i32_0 = arith.constant 0 : i32
    %c0_i32_1 = arith.constant 0 : i32
    return %c0_i32, %c0_i32_0 : i32, i32
  }
  func.func @transform_2(%arg0: i32) -> (i32, i32) {
    %c0_i32 = arith.constant 0 : i32
    %c0_i32_0 = arith.constant 0 : i32
    %c0_i32_1 = arith.constant 0 : i32
    return %c0_i32, %c0_i32_0 : i32, i32
  }
  func.func @transform_3(%arg0: i32) -> (i32, i32) {
    %c0_i32 = arith.constant 0 : i32
    %c0_i32_0 = arith.constant 0 : i32
    %c0_i32_1 = arith.constant 0 : i32
    return %c0_i32, %c0_i32_0 : i32, i32
  }
  func.func @transform_4(%arg0: i32) -> (i32, i32) {
    %c0_i32 = arith.constant 0 : i32
    %c0_i32_0 = arith.constant 0 : i32
    %c0_i32_1 = arith.constant 0 : i32
    return %c0_i32, %c0_i32_0 : i32, i32
  }
  func.func @transform_5(%arg0: i32) -> (i32, i32) {
    %c0_i32 = arith.constant 0 : i32
    %c0_i32_0 = arith.constant 0 : i32
    %c0_i32_1 = arith.constant 0 : i32
    return %c0_i32, %c0_i32_0 : i32, i32
  }
  func.func @transform_6(%arg0: i32) -> (i32, i32) {
    %c0_i32 = arith.constant 0 : i32
    %c0_i32_0 = arith.constant 0 : i32
    %c0_i32_1 = arith.constant 0 : i32
    return %c0_i32, %c0_i32_0 : i32, i32
  }
  func.func @transform_7(%arg0: i32) -> (i32, i32) {
    %c0_i32 = arith.constant 0 : i32
    %c0_i32_0 = arith.constant 0 : i32
    %c0_i32_1 = arith.constant 0 : i32
    return %c0_i32, %c0_i32_0 : i32, i32
  }
  func.func @transform_8(%arg0: i32) -> (i32, i32) {
    %c0_i32 = arith.constant 0 : i32
    %c0_i32_0 = arith.constant 0 : i32
    %c0_i32_1 = arith.constant 0 : i32
    return %c0_i32, %c0_i32_0 : i32, i32
  }
  func.func @transform_9(%arg0: i32) -> (i32, i32) {
    %c0_i32 = arith.constant 0 : i32
    %c0_i32_0 = arith.constant 0 : i32
    %c0_i32_1 = arith.constant 0 : i32
    return %c0_i32, %c0_i32_0 : i32, i32
  }
  func.func @transform_10(%arg0: i32) -> (i32, i32) {
    %c0_i32 = arith.constant 0 : i32
    %c0_i32_0 = arith.constant 0 : i32
    %c0_i32_1 = arith.constant 0 : i32
    return %c0_i32, %c0_i32_0 : i32, i32
  }
}

</mosaic_0001>

<bundles_post_ra>
// kernel: language_model_forward.1
= control target key start
LH: loop header
LB: loop body
LE: loop exit
PB: predicated region body
PF: predicated region fallthrough
CT: control target
= control target key end

     0   :  { %v2701_v0 = vmov 0   ;;  %v37_v35 = vlaneseq  ;;  %v2702_v39 = vmov 1.0   ;;  %v2703_v45 = vmov 0.0   ;;  %s3329_s0 = inlined_call_operand.vmem [shape: s32[16,1], index: 0, kind: input, shape index: {}]   ;;  %s3330_s1 = inlined_call_operand.vmem [shape: f32[256,32], index: 1, kind: input, shape index: {}]   ;;  %s3331_s2 = inlined_call_operand.vmem [shape: f32[32,128], index: 2, kind: input, shape index: {}]   ;;  %s3332_s3 = inlined_call_operand.vmem [shape: f32[32,128], index: 3, kind: input, shape index: {}]   ;;  %s3333_s4 = inlined_call_operand.vmem [shape: f32[1,128], index: 4, kind: input, shape index: {}]   ;;  %s3334_s5 = inlined_call_operand.vmem [shape: f32[32,128], index: 5, kind: input, shape index: {}]   ;;  %s3335_s6 = inlined_call_operand.vmem [shape: f32[32,128], index: 6, kind: input, shape index: {}]   ;;  %s3336_s7 = inlined_call_operand.vmem [shape: f32[1,128], index: 7, kind: input, shape index: {}]   ;;  %s3337_s8 = inlined_call_operand.vmem [shape: f32[32,256], index: 8, kind: input, shape index: {}]   ;;  %s3338_s9 = inlined_call_operand.vmem [shape: f32[1,256], index: 9, kind: input, shape index: {}]   ;;  %s3339_s10 = inlined_call_operand.vmem [shape: f32[16,256], index: 10, kind: output, shape index: {}]  }
   0x1   :  { %2572 = vset.pattern.permute.xlu0 %v2701_v0  ;;  %v35_v1 = vld [vmem:[%s3329_s0] sm:$0xff]  ;;  %v89_v2 = vld [vmem:[%s3330_s1 + $0xf8] sm:$0xff]  ;;  %v88_v4 = vld [vmem:[%s3330_s1 + $0xf0] sm:$0xff]  ;;  %vm2704_vm4 = vmmov 0   ;;  %vm183_vm5 = vcmask 261120   ;;  %vm1115_vm9 = vcmask 1041408  }
   0x2   :  { %41 = vperm.xlu0 %2572, %v35_v1   ;;  %2238 = vmatprep.subr.mxu0 %v89_v2  ;;  %v73_v3 = vld [vmem:[%s3330_s1 + $0x78] sm:$0xff]  ;;  %v72_v5 = vld [vmem:[%s3330_s1 + $0x70] sm:$0xff]  ;;  %v36_v6 = vld [vmem:[%s3329_s0 + $0x8] sm:$0xff]  ;;  %v2865_v36 = vand.u32 127, %v37_v35  ;;  %s2706_s0 = smov 32   ;;  %vm1117_vm10 = vcmask 1043456  }
   0x3   :  { %2239 = vmatpush3.msra.mxu0 %v73_v3  ;;  %v87_v7 = vld [vmem:[%s3330_s1 + $0xe8] sm:$0xff]  ;;  %v86_v9 = vld [vmem:[%s3330_s1 + $0xe0] sm:$0xff]  ;;  %v85_v11 = vld [vmem:[%s3330_s1 + $0xd8] sm:$0xff]  ;;  %vm1119_vm11 = vcmask 1045504  }
   0x4   :  { %2240 = vmatprep.subr.mxu0 %v88_v4  ;;  %v71_v8 = vld [vmem:[%s3330_s1 + $0x68] sm:$0xff]  ;;  %v70_v10 = vld [vmem:[%s3330_s1 + $0x60] sm:$0xff]  ;;  %v69_v12 = vld [vmem:[%s3330_s1 + $0x58] sm:$0xff]  ;;  %v39_v37 = vadd.s32 128, %v2865_v36  ;;  %vm165_vm6 = vcmp.ge.s32.totalorder %v2865_v36, 64  ;;  %vm166_vm7 = vcmp.lt.s32.totalorder %v2865_v36, 96 }
   0x5   :  { %2241 = vmatpush3.msra.mxu0 %v72_v5  ;;  %v84_v13 = vld [vmem:[%s3330_s1 + $0xd0] sm:$0xff]  ;;  %v83_v15 = vld [vmem:[%s3330_s1 + $0xc8] sm:$0xff]  ;;  %v82_v17 = vld [vmem:[%s3330_s1 + $0xc0] sm:$0xff] }
   0x6   :  { %44 = vperm.xlu0 %2572, %v36_v6   ;;  %2242 = vmatprep.subr.mxu0 %v87_v7  ;;  %v68_v14 = vld [vmem:[%s3330_s1 + $0x50] sm:$0xff]  ;;  %v67_v16 = vld [vmem:[%s3330_s1 + $0x48] sm:$0xff]  ;;  %v66_v18 = vld [vmem:[%s3330_s1 + $0x40] sm:$0xff] }
   0x7   :  { %2243 = vmatpush3.msra.mxu0 %v71_v8  ;;  %v81_v19 = vld [vmem:[%s3330_s1 + $0xb8] sm:$0xff]  ;;  %v80_v21 = vld [vmem:[%s3330_s1 + $0xb0] sm:$0xff]  ;;  %v79_v23 = vld [vmem:[%s3330_s1 + $0xa8] sm:$0xff] }
   0x8   :  { %2244 = vmatprep.subr.mxu0 %v86_v9  ;;  %v65_v20 = vld [vmem:[%s3330_s1 + $0x38] sm:$0xff]  ;;  %v64_v22 = vld [vmem:[%s3330_s1 + $0x30] sm:$0xff]  ;;  %v63_v24 = vld [vmem:[%s3330_s1 + $0x28] sm:$0xff] }
   0x9   :  { %2245 = vmatpush3.msra.mxu0 %v70_v10  ;;  %v78_v25 = vld [vmem:[%s3330_s1 + $0xa0] sm:$0xff]  ;;  %v77_v27 = vld [vmem:[%s3330_s1 + $0x98] sm:$0xff]  ;;  %v76_v29 = vld [vmem:[%s3330_s1 + $0x90] sm:$0xff] }
   0xa   :  { %2246 = vmatprep.subr.mxu0 %v85_v11  ;;  %v62_v26 = vld [vmem:[%s3330_s1 + $0x20] sm:$0xff]  ;;  %v61_v28 = vld [vmem:[%s3330_s1 + $0x18] sm:$0xff]  ;;  %v60_v30 = vld [vmem:[%s3330_s1 + $0x10] sm:$0xff] }
   0xb   :  { %2247 = vmatpush3.msra.mxu0 %v69_v12  ;;  %v75_v31 = vld [vmem:[%s3330_s1 + $0x88] sm:$0xff]  ;;  %v74_v33 = vld [vmem:[%s3330_s1 + $0x80] sm:$0xff]  ;;  %v171_v41 = vld [vmem:[%s3331_s2 + $0x18] sm:$0xff] }
   0xc   :  { %2248 = vmatprep.subr.mxu0 %v84_v13  ;;  %v59_v32 = vld [vmem:[%s3330_s1 + $0x8] sm:$0xff]  ;;  %v58_v34 = vld [vmem:[%s3330_s1] sm:$0xff]  ;;  %2368 = vmatprep.subr.mxu1 %v171_v41  ;;  %v170_v42 = vld [vmem:[%s3331_s2 + $0x10] sm:$0xff] }
   0xd   :  { %2249 = vmatpush3.msra.mxu0 %v68_v14  ;;  %2369 = vmatpush3.msra.mxu1 %v171_v41  ;;  %v169_v43 = vld [vmem:[%s3331_s2 + $0x8] sm:$0xff]  ;;  %v168_v44 = vld [vmem:[%s3331_s2] sm:$0xff]  ;;  %v2886_v46 = vld [vmem:[%s3332_s3 + $0x18] sm:$0xff] }
   0xe   :  { %2250 = vmatprep.subr.mxu0 %v83_v15  ;;  %2370 = vmatprep.subr.mxu1 %v170_v42  ;;  %v2894_v47 = vld [vmem:[%s3332_s3 + $0x10] sm:$0xff]  ;;  %v2900_v48 = vld [vmem:[%s3332_s3 + $0x8] sm:$0xff]  ;;  %v2907_v49 = vld [vmem:[%s3332_s3] sm:$0xff] }
   0xf   :  { %2251 = vmatpush3.msra.mxu0 %v67_v16  ;;  %2371 = vmatpush3.msra.mxu1 %v170_v42  ;;  %v2200_v56 = vld [vmem:[%s3333_s4] ss:$0 sm:$0xff]  ;;  %vm2947_vm8 = vmand %vm165_vm6, %vm166_vm7  ;;  %s2705_s4 = smov 64  }
  0x10   :  { %2252 = vmatprep.subr.mxu0 %v82_v17  ;;  %2372 = vmatprep.subr.mxu1 %v169_v43  ;;  %v2077_v3 = vld [vmem:[%s3337_s8] sm:$0xff] }
  0x11   :  { %2253 = vmatpush3.msra.mxu0 %v66_v18  ;;  %2373 = vmatpush3.msra.mxu1 %v169_v43 }
  0x12   :  { %2254 = vmatprep.subr.mxu0 %v81_v19  ;;  %2374 = vmatprep.subr.mxu1 %v168_v44 }
  0x13   :  { %2255 = vmatpush3.msra.mxu0 %v65_v20  ;;  %2375 = vmatpush3.msra.mxu1 %v168_v44 }
  0x14   :  { %2256 = vmatprep.subr.mxu0 %v80_v21  ;;  %2379 = vmatprep.subr.mxu1 %v2703_v45 }
  0x15   :  { %2257 = vmatpush3.msra.mxu0 %v64_v22 }
  0x16   :  { %2258 = vmatprep.subr.mxu0 %v79_v23 }
  0x17   :  { %2259 = vmatpush3.msra.mxu0 %v63_v24 }
  0x18   :  { %2260 = vmatprep.subr.mxu0 %v78_v25 }
  0x19   :  { %2261 = vmatpush3.msra.mxu0 %v62_v26 }
  0x1a   :  { %2262 = vmatprep.subr.mxu0 %v77_v27 }
  0x1b   :  { %2263 = vmatpush3.msra.mxu0 %v61_v28 }
  0x1c   :  { %2264 = vmatprep.subr.mxu0 %v76_v29 }
  0x1d   :  { %2265 = vmatpush3.msra.mxu0 %v60_v30 }
  0x1e   :  { %2266 = vmatprep.subr.mxu0 %v75_v31 }
  0x1f   :  { %2267 = vmatpush3.msra.mxu0 %v59_v32 }
  0x20   :  { %2268 = vmatprep.subr.mxu0 %v74_v33 }
  0x21   :  { %2269 = vmatpush3.msra.mxu0 %v58_v34 }
  0x22   :  { %2434 = vmatprep.subr.mxu0 %v2703_v45 }
  0x7d   :  { %v42_v38 = vpop.permute.xlu0 %41 }
  0x7e   :  { %vm46_vm0 = vcmp.eq.s32.totalorder %v2865_v36, %v42_v38  ;;  %vm47_vm1 = vcmp.eq.s32.totalorder %v39_v37, %v42_v38 }
  0x7f   :  { %2196 = vmatprep.mubr.msk.f32.mxu0 %vm47_vm1, %v2702_v39 }
  0x80   :  { %2197 = vmatmul.mubr.msk.f32.vlgmr.msra.gmra.mxu0 %vm46_vm0, %v2702_v39 }
  0x81   :  { %v45_v40 = vpop.permute.xlu0 %44  ;;  %2435 = vmatpush3.msra.mxu0 %v2886_v46 }
  0x82   :  { %vm48_vm2 = vcmp.eq.s32.totalorder %v2865_v36, %v45_v40  ;;  %vm49_vm3 = vcmp.eq.s32.totalorder %v39_v37, %v45_v40  ;;  %2436 = vmatprep.subr.mxu0 %v2703_v45 }
  0x83   :  { %2198 = vmatprep.mubr.msk.f32.mxu0 %vm49_vm3, %v2702_v39  ;;  %2437 = vmatpush3.msra.mxu0 %v2894_v47 }
  0x84   :  { %2199 = vmatmul.mubr.msk.f32.gmra.mxu0 %vm48_vm2, %v2702_v39  ;;  %2438 = vmatprep.subr.mxu0 %v2703_v45 }
  0x85   :  { %2439 = vmatpush3.msra.mxu0 %v2900_v48  ;;  %2442 = vmatprep.mubr.msk.f32.mxu0 %vm2704_vm4, %v2703_v45 }
  0x86   :  { %2440 = vmatprep.subr.mxu0 %v2703_v45 }
  0x87   :  { %2441 = vmatpush3.msra.mxu0 %v2907_v49 }
  0x88   :  { %2456 = vmatprep.subr.mxu0 %v2703_v45 }
 0x140   :  { %v2270_v50 = vpop.f32.mrf.mxu0 }
 0x142   :  { %v2271_v51 = vpop.f32.mrf.mxu0 }
 0x143   :  { %v2272_v52 = vadd.f32 %v2271_v51, %v2270_v50 }
 0x144   :  { %v2273_v53 = vpop.f32.mrf.mxu0 }
 0x145   :  { %2376 = vmatprep.mubr.msk.f32.mxu1 %vm183_vm5, %v2272_v52 }
 0x146   :  { %v2274_v54 = vpop.f32.mrf.mxu0 }
 0x147   :  { %v2275_v55 = vadd.f32 %v2274_v54, %v2273_v53 }
 0x149   :  { %2377 = vmatmul.mubr.msk.f32.vlgmr.msra.gmra.mxu1 %vm183_vm5, %v2275_v55 }
 0x14a   :  { %2380 = vmatpush3.msra.mxu1 %v2886_v46  ;;  %2387 = vmatprep.mubr.msk.f32.mxu1 %vm2704_vm4, %v2703_v45 }
 0x14b   :  { %2381 = vmatprep.subr.mxu1 %v2703_v45 }
 0x14c   :  { %2382 = vmatpush3.msra.mxu1 %v2894_v47 }
 0x14d   :  { %2383 = vmatprep.subr.mxu1 %v2703_v45 }
 0x14e   :  { %2384 = vmatpush3.msra.mxu1 %v2900_v48 }
 0x14f   :  { %2385 = vmatprep.subr.mxu1 %v2703_v45 }
 0x150   :  { %2386 = vmatpush3.msra.mxu1 %v2907_v49 }
 0x151   :  { %2388 = vmatmul.mubr.f32.vlgmr.msra.gmra.mxu1 %v2703_v45  ;;  %2390 = vmatprep.subr.mxu1 %v2703_v45 }
 0x152   :  { %2391 = vmatpush3.msra.mxu1 %v2886_v46  ;;  %2398 = vmatprep.mubr.msk.f32.mxu1 %vm2704_vm4, %v2703_v45 }
 0x153   :  { %2392 = vmatprep.subr.mxu1 %v2703_v45 }
 0x154   :  { %2393 = vmatpush3.msra.mxu1 %v2894_v47 }
 0x155   :  { %2394 = vmatprep.subr.mxu1 %v2703_v45 }
 0x156   :  { %2395 = vmatpush3.msra.mxu1 %v2900_v48 }
 0x157   :  { %2396 = vmatprep.subr.mxu1 %v2703_v45 }
 0x158   :  { %2397 = vmatpush3.msra.mxu1 %v2907_v49 }
 0x159   :  { %2401 = vmatprep.subr.mxu1 %v2703_v45 }
 0x209   :  { %v2378_v57 = vpop.f32.mrf.mxu1 }
 0x20a   :  { %v2940_v58 = vadd.f32 %v2378_v57, %v2200_v56 }
 0x20b   :  { %v256_v59 = vpop.f32.mrf.mxu1 }
 0x20c   :  { %v2942_v60 = vadd.f32 %v2200_v56, %v256_v59 }
 0x211   :  { %v334_v61 = vpop.f32.mrf.mxu1 }
 0x212   :  { %v338_v62 = vadd.f32 %v334_v61, %v2942_v60 }
 0x213   :  { %v2389_v63 = vpop.f32.mrf.mxu1 }
 0x214   :  { %v2203_v0 = vmul.f32 -1.442695, %v338_v62 }
 0x216   :  { %2573 = vpow2.f32 %v2203_v0 }
 0x217   :  { %2575 = vtanh.f32 %v338_v62 }
 0x223   :  { %v2574_v1 = vpop.eup %2573 }
 0x224   :  { %v342_v2 = vadd.f32 1.0, %v2574_v1  ;;  %v2576_v4 = vpop.eup %2575 }
 0x226   :  { %2577 = vrcp.f32 %v342_v2 }
 0x233   :  { %v2578_v5 = vpop.eup %2577 }
 0x234   :  { %v346_v6 = vsel %vm2947_vm8, %v2576_v4, %v2578_v5 }
 0x235   :  { %349 = vrot.lane.b32.xlu1 %v346_v6, %s2705_s4  ;;  %v347_v9 = vmul.f32 0.0, %v346_v6 }
 0x2a7   :  { %v350_v7 = vpop.permute.xlu1 %349 }
 0x2a8   :  { %v352_v8 = vmul.f32 %v350_v7, %v346_v6 }
 0x2aa   :  { %354 = vrot.lane.b32.xlu1 %v352_v8, %s2706_s0 }
 0x31c   :  { %v355_v10 = vpop.permute.xlu1 %354 }
 0x31d   :  { %v357_v11 = vadd.f32 %v355_v10, %v347_v9 }
 0x31f   :  { %2579 = vtanh.f32 %v357_v11  ;;  %v452_v28 = vrot.slane %v357_v11, 6 }
 0x32c   :  { %v2580_v12 = vpop.eup %2579 }
 0x32d   :  { %360 = vrot.lane.b32.xlu0 %v2580_v12, %s2705_s4 }
 0x39f   :  { %v361_v13 = vpop.permute.xlu0 %360 }
 0x3a0   :  { %v2956_v14 = vmul.f32 %v361_v13, %v346_v6 }
 0x3a2   :  { %365 = vrot.lane.b32.xlu1 %v2956_v14, %s2706_s0 }
 0x414   :  { %v366_v15 = vpop.permute.xlu1 %365 }
 0x415   :  { %2399 = vmatmul.mubr.msk.f32.vlgmr.msra.gmra.mxu1 %vm183_vm5, %v366_v15 }
 0x416   :  { %2402 = vmatpush3.msra.mxu1 %v2886_v46  ;;  %2409 = vmatprep.mubr.msk.f32.mxu1 %vm2704_vm4, %v2703_v45 }
 0x417   :  { %2403 = vmatprep.subr.mxu1 %v2703_v45 }
 0x418   :  { %2404 = vmatpush3.msra.mxu1 %v2894_v47 }
 0x419   :  { %2405 = vmatprep.subr.mxu1 %v2703_v45 }
 0x41a   :  { %2406 = vmatpush3.msra.mxu1 %v2900_v48 }
 0x41b   :  { %2407 = vmatprep.subr.mxu1 %v2703_v45 }
 0x41c   :  { %2408 = vmatpush3.msra.mxu1 %v2907_v49 }
 0x41d   :  { %2412 = vmatprep.subr.mxu1 %v2703_v45 }
 0x4d5   :  { %v435_v16 = vpop.f32.mrf.mxu1 }
 0x4d6   :  { %v440_v17 = vrot.slane %v435_v16, 6 }
 0x4d7   :  { %v2400_v18 = vpop.f32.mrf.mxu1 }
 0x4d8   :  { %v442_v19 = vadd.f32 %v440_v17, %v2942_v60 }
 0x4da   :  { %v2205_v20 = vmul.f32 -1.442695, %v442_v19 }
 0x4dc   :  { %2581 = vpow2.f32 %v2205_v20 }
 0x4dd   :  { %2583 = vtanh.f32 %v442_v19 }
 0x4e9   :  { %v2582_v21 = vpop.eup %2581 }
 0x4ea   :  { %v446_v22 = vadd.f32 1.0, %v2582_v21  ;;  %v2584_v23 = vpop.eup %2583 }
 0x4ec   :  { %2585 = vrcp.f32 %v446_v22 }
 0x4f9   :  { %v2586_v24 = vpop.eup %2585 }
 0x4fa   :  { %v450_v25 = vsel %vm2947_vm8, %v2584_v23, %v2586_v24 }
 0x4fb   :  { %456 = vrot.lane.b32.xlu0 %v450_v25, %s2705_s4  ;;  %v454_v29 = vmul.f32 %v452_v28, %v450_v25 }
 0x56d   :  { %v457_v26 = vpop.permute.xlu0 %456 }
 0x56e   :  { %v459_v27 = vmul.f32 %v457_v26, %v450_v25 }
 0x570   :  { %461 = vrot.lane.b32.xlu1 %v459_v27, %s2706_s0 }
 0x5e2   :  { %v462_v30 = vpop.permute.xlu1 %461 }
 0x5e3   :  { %v464_v31 = vadd.f32 %v462_v30, %v454_v29 }
 0x5e5   :  { %2587 = vtanh.f32 %v464_v31  ;;  %v560_v55 = vrot.slane %v464_v31, 6 }
 0x5f2   :  { %v2588_v32 = vpop.eup %2587 }
 0x5f3   :  { %467 = vrot.lane.b32.xlu0 %v2588_v32, %s2705_s4 }
 0x665   :  { %v468_v33 = vpop.permute.xlu0 %467 }
 0x666   :  { %v470_v34 = vmul.f32 %v468_v33, %v450_v25 }
 0x668   :  { %v472_v36 = vrot.slane %v470_v34, 2  ;;  %v1116_v0 = vsel %vm1115_vm9, %v2956_v14, %v470_v34 }
 0x66a   :  { %473 = vrot.lane.b32.xlu1 %v472_v36, %s2706_s0 }
 0x6dc   :  { %v474_v37 = vpop.permute.xlu1 %473 }
 0x6dd   :  { %2410 = vmatmul.mubr.msk.f32.vlgmr.msra.gmra.mxu1 %vm183_vm5, %v474_v37 }
 0x6de   :  { %2413 = vmatpush3.msra.mxu1 %v2886_v46  ;;  %2420 = vmatprep.mubr.msk.f32.mxu1 %vm2704_vm4, %v2703_v45 }
 0x6df   :  { %2414 = vmatprep.subr.mxu1 %v2703_v45 }
 0x6e0   :  { %2415 = vmatpush3.msra.mxu1 %v2894_v47 }
 0x6e1   :  { %2416 = vmatprep.subr.mxu1 %v2703_v45 }
 0x6e2   :  { %2417 = vmatpush3.msra.mxu1 %v2900_v48 }
 0x6e3   :  { %2418 = vmatprep.subr.mxu1 %v2703_v45 }
 0x6e4   :  { %2419 = vmatpush3.msra.mxu1 %v2907_v49 }
 0x6e5   :  { %2423 = vmatprep.subr.mxu1 %v2703_v45 }
 0x79d   :  { %v543_v38 = vpop.f32.mrf.mxu1 }
 0x79e   :  { %v548_v39 = vrot.slane %v543_v38, 4 }
 0x79f   :  { %v2411_v40 = vpop.f32.mrf.mxu1 }
 0x7a0   :  { %v550_v41 = vadd.f32 %v548_v39, %v2942_v60 }
 0x7a2   :  { %v2207_v42 = vmul.f32 -1.442695, %v550_v41 }
 0x7a4   :  { %2589 = vpow2.f32 %v2207_v42 }
 0x7a5   :  { %2591 = vtanh.f32 %v550_v41 }
 0x7b1   :  { %v2590_v43 = vpop.eup %2589 }
 0x7b2   :  { %v554_v44 = vadd.f32 1.0, %v2590_v43  ;;  %v2592_v50 = vpop.eup %2591 }
 0x7b4   :  { %2593 = vrcp.f32 %v554_v44 }
 0x7c1   :  { %v2594_v51 = vpop.eup %2593 }
 0x7c2   :  { %v558_v52 = vsel %vm2947_vm8, %v2592_v50, %v2594_v51 }
 0x7c3   :  { %564 = vrot.lane.b32.xlu0 %v558_v52, %s2705_s4  ;;  %v562_v56 = vmul.f32 %v560_v55, %v558_v52 }
 0x835   :  { %v565_v53 = vpop.permute.xlu0 %564 }
 0x836   :  { %v567_v54 = vmul.f32 %v565_v53, %v558_v52 }
 0x838   :  { %569 = vrot.lane.b32.xlu1 %v567_v54, %s2706_s0 }
 0x8aa   :  { %v570_v57 = vpop.permute.xlu1 %569 }
 0x8ab   :  { %v572_v59 = vadd.f32 %v570_v57, %v562_v56 }
 0x8ad   :  { %2595 = vtanh.f32 %v572_v59  ;;  %v668_v17 = vrot.slane %v572_v59, 6 }
 0x8ba   :  { %v2596_v61 = vpop.eup %2595 }
 0x8bb   :  { %575 = vrot.lane.b32.xlu0 %v2596_v61, %s2705_s4 }
 0x92d   :  { %v576_v62 = vpop.permute.xlu0 %575 }
 0x92e   :  { %v578_v63 = vmul.f32 %v576_v62, %v558_v52 }
 0x930   :  { %v580_v1 = vrot.slane %v578_v63, 4  ;;  %v1118_v2 = vsel %vm1117_vm10, %v1116_v0, %v578_v63 }
 0x932   :  { %581 = vrot.lane.b32.xlu1 %v580_v1, %s2706_s0 }
 0x9a4   :  { %v582_v4 = vpop.permute.xlu1 %581 }
 0x9a5   :  { %2421 = vmatmul.mubr.msk.f32.vlgmr.msra.gmra.mxu1 %vm183_vm5, %v582_v4 }
 0x9a6   :  { %2424 = vmatpush3.msra.mxu1 %v2886_v46  ;;  %2431 = vmatprep.mubr.msk.f32.mxu1 %vm2704_vm4, %v2703_v45 }
 0x9a7   :  { %2425 = vmatprep.subr.mxu1 %v2703_v45 }
 0x9a8   :  { %2426 = vmatpush3.msra.mxu1 %v2894_v47 }
 0x9a9   :  { %2427 = vmatprep.subr.mxu1 %v2703_v45 }
 0x9aa   :  { %2428 = vmatpush3.msra.mxu1 %v2900_v48 }
 0x9ab   :  { %2429 = vmatprep.subr.mxu1 %v2703_v45 }
 0x9ac   :  { %2430 = vmatpush3.msra.mxu1 %v2907_v49 }
 0x9ad   :  { %2445 = vmatprep.subr.mxu1 %v2703_v45 }
 0xa65   :  { %v651_v5 = vpop.f32.mrf.mxu1 }
 0xa66   :  { %v656_v6 = vrot.slane %v651_v5, 2 }
 0xa67   :  { %v2422_v7 = vpop.f32.mrf.mxu1 }
 0xa68   :  { %v658_v8 = vadd.f32 %v656_v6, %v2942_v60 }
 0xa6a   :  { %v2209_v9 = vmul.f32 -1.442695, %v658_v8 }
 0xa6c   :  { %2597 = vpow2.f32 %v2209_v9 }
 0xa6d   :  { %2599 = vtanh.f32 %v658_v8 }
 0xa79   :  { %v2598_v10 = vpop.eup %2597 }
 0xa7a   :  { %v662_v11 = vadd.f32 1.0, %v2598_v10  ;;  %v2600_v12 = vpop.eup %2599 }
 0xa7c   :  { %2601 = vrcp.f32 %v662_v11 }
 0xa89   :  { %v2602_v13 = vpop.eup %2601 }
 0xa8a   :  { %v666_v14 = vsel %vm2947_vm8, %v2600_v12, %v2602_v13 }
 0xa8b   :  { %672 = vrot.lane.b32.xlu0 %v666_v14, %s2705_s4  ;;  %v670_v18 = vmul.f32 %v668_v17, %v666_v14 }
 0xafd   :  { %v673_v15 = vpop.permute.xlu0 %672 }
 0xafe   :  { %v675_v16 = vmul.f32 %v673_v15, %v666_v14 }
 0xb00   :  { %677 = vrot.lane.b32.xlu1 %v675_v16, %s2706_s0 }
 0xb72   :  { %v678_v60 = vpop.permute.xlu1 %677 }
 0xb73   :  { %v680_v19 = vadd.f32 %v678_v60, %v670_v18 }
 0xb75   :  { %2603 = vtanh.f32 %v680_v19  ;;  %v773_v38 = vrot.slane %v680_v19, 6 }
 0xb82   :  { %v2604_v20 = vpop.eup %2603 }
 0xb83   :  { %683 = vrot.lane.b32.xlu0 %v2604_v20, %s2705_s4 }
 0xbf5   :  { %v684_v21 = vpop.permute.xlu0 %683 }
 0xbf6   :  { %v686_v22 = vmul.f32 %v684_v21, %v666_v14 }
 0xbf8   :  { %v688_v23 = vrot.slane %v686_v22, 6  ;;  %v3017_v24 = vsel %vm1119_vm11, %v1118_v2, %v686_v22 }
 0xbfa   :  { %689 = vrot.lane.b32.xlu1 %v688_v23, %s2706_s0 }
 0xc6c   :  { %v690_v25 = vpop.permute.xlu1 %689 }
 0xc6d   :  { %2432 = vmatmul.mubr.msk.f32.vlgmr.msra.gmra.mxu1 %vm183_vm5, %v690_v25 }
 0xc6e   :  { %2446 = vmatpush3.msra.mxu1 %v2886_v46  ;;  %2453 = vmatprep.mubr.msk.f32.mxu1 %vm2704_vm4, %v2703_v45 }
 0xc6f   :  { %2447 = vmatprep.subr.mxu1 %v2703_v45 }
 0xc70   :  { %2448 = vmatpush3.msra.mxu1 %v2894_v47 }
 0xc71   :  { %2449 = vmatprep.subr.mxu1 %v2703_v45 }
 0xc72   :  { %2450 = vmatpush3.msra.mxu1 %v2900_v48 }
 0xc73   :  { %2451 = vmatprep.subr.mxu1 %v2703_v45 }
 0xc74   :  { %2452 = vmatpush3.msra.mxu1 %v2907_v49 }
 0xd2d   :  { %v759_v26 = vpop.f32.mrf.mxu1 }
 0xd2e   :  { %v763_v27 = vadd.f32 %v759_v26, %v2940_v58 }
 0xd2f   :  { %v2433_v28 = vpop.f32.mrf.mxu1 }
 0xd30   :  { %v2211_v29 = vmul.f32 -1.442695, %v763_v27 }
 0xd32   :  { %2605 = vpow2.f32 %v2211_v29 }
 0xd33   :  { %2607 = vtanh.f32 %v763_v27 }
 0xd3f   :  { %v2606_v30 = vpop.eup %2605 }
 0xd40   :  { %v767_v31 = vadd.f32 1.0, %v2606_v30  ;;  %v2608_v32 = vpop.eup %2607 }
 0xd42   :  { %2609 = vrcp.f32 %v767_v31 }
 0xd4f   :  { %v2610_v33 = vpop.eup %2609 }
 0xd50   :  { %v771_v34 = vsel %vm2947_vm8, %v2608_v32, %v2610_v33 }
 0xd51   :  { %777 = vrot.lane.b32.xlu0 %v771_v34, %s2705_s4  ;;  %v775_v39 = vmul.f32 %v773_v38, %v771_v34 }
 0xdc3   :  { %v778_v36 = vpop.permute.xlu0 %777 }
 0xdc4   :  { %v780_v37 = vmul.f32 %v778_v36, %v771_v34 }
 0xdc6   :  { %782 = vrot.lane.b32.xlu1 %v780_v37, %s2706_s0 }
 0xe38   :  { %v783_v40 = vpop.permute.xlu1 %782 }
 0xe39   :  { %v785_v41 = vadd.f32 %v783_v40, %v775_v39 }
 0xe3b   :  { %2611 = vtanh.f32 %v785_v41  ;;  %v880_v61 = vrot.slane %v785_v41, 6 }
 0xe48   :  { %v2612_v42 = vpop.eup %2611 }
 0xe49   :  { %788 = vrot.lane.b32.xlu0 %v2612_v42, %s2705_s4 }
 0xebb   :  { %v789_v43 = vpop.permute.xlu0 %788 }
 0xebc   :  { %v3036_v44 = vmul.f32 %v789_v43, %v771_v34 }
 0xebe   :  { %793 = vrot.lane.b32.xlu1 %v3036_v44, %s2706_s0 }
 0xf30   :  { %v794_v50 = vpop.permute.xlu1 %793 }
 0xf31   :  { %2443 = vmatmul.mubr.msk.f32.vlgmr.msra.gmra.mxu0 %vm183_vm5, %v794_v50 }
 0xf32   :  { %2457 = vmatpush3.msra.mxu0 %v2886_v46  ;;  %2464 = vmatprep.mubr.msk.f32.mxu0 %vm2704_vm4, %v2703_v45 }
 0xf33   :  { %2458 = vmatprep.subr.mxu0 %v2703_v45 }
 0xf34   :  { %2459 = vmatpush3.msra.mxu0 %v2894_v47 }
 0xf35   :  { %2460 = vmatprep.subr.mxu0 %v2703_v45 }
 0xf36   :  { %2461 = vmatpush3.msra.mxu0 %v2900_v48 }
 0xf37   :  { %2462 = vmatprep.subr.mxu0 %v2703_v45 }
 0xf38   :  { %2463 = vmatpush3.msra.mxu0 %v2907_v49 }
 0xf39   :  { %2478 = vmatprep.subr.mxu0 %v2703_v45 }
 0xff1   :  { %v863_v51 = vpop.f32.mrf.mxu0 }
 0xff2   :  { %v868_v52 = vrot.slane %v863_v51, 6 }
 0xff3   :  { %v2444_v46 = vpop.f32.mrf.mxu0 }
 0xff4   :  { %v870_v53 = vadd.f32 %v868_v52, %v2940_v58  ;;  %v1127_v52 = vld [vmem:[%s3334_s5 + $0x18] sm:$0xff]  ;;  %v1126_v46 = vld [vmem:[%s3334_s5 + $0x10] sm:$0xff] }
 0xff5   :  { %2467 = vmatprep.subr.mxu1 %v1127_v52 }
 0xff6   :  { %v2213_v54 = vmul.f32 -1.442695, %v870_v53 }
 0xff8   :  { %2613 = vpow2.f32 %v2213_v54  ;;  %v1125_v54 = vld [vmem:[%s3334_s5 + $0x8] sm:$0xff] }
 0xff9   :  { %2615 = vtanh.f32 %v870_v53  ;;  %v3097_v53 = vld [vmem:[%s3335_s6 + $0x10] sm:$0xff] }
0x1005   :  { %v2614_v55 = vpop.eup %2613 }
0x1006   :  { %v874_v56 = vadd.f32 1.0, %v2614_v55  ;;  %v2616_v47 = vpop.eup %2615  ;;  %v3106_v55 = vld [vmem:[%s3335_s6 + $0x8] sm:$0xff] }
0x1008   :  { %2617 = vrcp.f32 %v874_v56  ;;  %v1124_v56 = vld [vmem:[%s3334_s5] sm:$0xff] }
0x1015   :  { %v2618_v57 = vpop.eup %2617 }
0x1016   :  { %v878_v48 = vsel %vm2947_vm8, %v2616_v47, %v2618_v57  ;;  %v3120_v57 = vld [vmem:[%s3335_s6] sm:$0xff] }
0x1017   :  { %884 = vrot.lane.b32.xlu0 %v878_v48, %s2705_s4  ;;  %v882_v62 = vmul.f32 %v880_v61, %v878_v48 }
0x1089   :  { %v885_v49 = vpop.permute.xlu0 %884 }
0x108a   :  { %v887_v59 = vmul.f32 %v885_v49, %v878_v48 }
0x108c   :  { %889 = vrot.lane.b32.xlu1 %v887_v59, %s2706_s0 }
0x10fe   :  { %v890_v63 = vpop.permute.xlu1 %889 }
0x10ff   :  { %v892_v0 = vadd.f32 %v890_v63, %v882_v62 }
0x1101   :  { %2619 = vtanh.f32 %v892_v0  ;;  %v988_v60 = vrot.slane %v892_v0, 6  ;;  %v2218_v0 = vld [vmem:[%s3336_s7] ss:$0 sm:$0xff] }
0x110e   :  { %v2620_v1 = vpop.eup %2619 }
0x110f   :  { %895 = vrot.lane.b32.xlu0 %v2620_v1, %s2705_s4 }
0x1181   :  { %v896_v2 = vpop.permute.xlu0 %895 }
0x1182   :  { %v898_v4 = vmul.f32 %v896_v2, %v878_v48 }
0x1184   :  { %v900_v5 = vrot.slane %v898_v4, 2  ;;  %v1121_v26 = vsel %vm1115_vm9, %v3036_v44, %v898_v4 }
0x1186   :  { %901 = vrot.lane.b32.xlu1 %v900_v5, %s2706_s0 }
0x11f8   :  { %v902_v6 = vpop.permute.xlu1 %901 }
0x11f9   :  { %2454 = vmatmul.mubr.msk.f32.vlgmr.msra.gmra.mxu1 %vm183_vm5, %v902_v6 }
0x11fa   :  { %2468 = vmatpush3.msra.mxu1 %v1127_v52 }
0x11fb   :  { %2469 = vmatprep.subr.mxu1 %v1126_v46 }
0x11fc   :  { %2470 = vmatpush3.msra.mxu1 %v1126_v46 }
0x11fd   :  { %2471 = vmatprep.subr.mxu1 %v1125_v54 }
0x11fe   :  { %2472 = vmatpush3.msra.mxu1 %v1125_v54 }
0x11ff   :  { %2473 = vmatprep.subr.mxu1 %v1124_v56 }
0x1200   :  { %2474 = vmatpush3.msra.mxu1 %v1124_v56 }
0x1201   :  { %2489 = vmatprep.subr.mxu1 %v2703_v45 }
0x12b9   :  { %v971_v7 = vpop.f32.mrf.mxu1 }
0x12ba   :  { %v976_v8 = vrot.slane %v971_v7, 4 }
0x12bb   :  { %v2455_v9 = vpop.f32.mrf.mxu1 }
0x12bc   :  { %v978_v10 = vadd.f32 %v976_v8, %v2940_v58 }
0x12be   :  { %v2215_v11 = vmul.f32 -1.442695, %v978_v10 }
0x12c0   :  { %2621 = vpow2.f32 %v2215_v11 }
0x12c1   :  { %2623 = vtanh.f32 %v978_v10 }
0x12cd   :  { %v2622_v12 = vpop.eup %2621 }
0x12ce   :  { %v982_v13 = vadd.f32 1.0, %v2622_v12  ;;  %v2624_v14 = vpop.eup %2623 }
0x12d0   :  { %2625 = vrcp.f32 %v982_v13 }
0x12dd   :  { %v2626_v15 = vpop.eup %2625 }
0x12de   :  { %v986_v16 = vsel %vm2947_vm8, %v2624_v14, %v2626_v15 }
0x12df   :  { %992 = vrot.lane.b32.xlu0 %v986_v16, %s2705_s4  ;;  %v990_v19 = vmul.f32 %v988_v60, %v986_v16 }
0x1351   :  { %v993_v17 = vpop.permute.xlu0 %992 }
0x1352   :  { %v995_v18 = vmul.f32 %v993_v17, %v986_v16 }
0x1354   :  { %997 = vrot.lane.b32.xlu1 %v995_v18, %s2706_s0 }
0x13c6   :  { %v998_v20 = vpop.permute.xlu1 %997 }
0x13c7   :  { %v1000_v21 = vadd.f32 %v998_v20, %v990_v19 }
0x13c9   :  { %2627 = vtanh.f32 %v1000_v21 }
0x13d6   :  { %v2628_v22 = vpop.eup %2627 }
0x13d7   :  { %1003 = vrot.lane.b32.xlu0 %v2628_v22, %s2705_s4 }
0x1449   :  { %v1004_v23 = vpop.permute.xlu0 %1003 }
0x144a   :  { %v1006_v25 = vmul.f32 %v1004_v23, %v986_v16 }
0x144c   :  { %v1008_v27 = vrot.slane %v1006_v25, 4  ;;  %v3068_v28 = vsel %vm1117_vm10, %v1121_v26, %v1006_v25 }
0x144e   :  { %1009 = vrot.lane.b32.xlu1 %v1008_v27, %s2706_s0 }
0x14c0   :  { %v1010_v29 = vpop.permute.xlu1 %1009 }
0x14c1   :  { %2465 = vmatmul.mubr.msk.f32.vlgmr.msra.gmra.mxu0 %vm183_vm5, %v1010_v29 }
0x14c2   :  { %2486 = vmatprep.mubr.msk.f32.mxu0 %vm2704_vm4, %v2703_v45 }
0x1581   :  { %v1079_v30 = vpop.f32.mrf.mxu0 }
0x1582   :  { %v1084_v31 = vrot.slane %v1079_v30, 2 }
0x1583   :  { %v2466_v32 = vpop.f32.mrf.mxu0 }
0x1584   :  { %v1086_v33 = vadd.f32 %v1084_v31, %v2940_v58  ;;  %v1096_v58 = vrot.slane %v1000_v21, 6 }
0x1586   :  { %v2217_v34 = vmul.f32 -1.442695, %v1086_v33 }
0x1588   :  { %2629 = vpow2.f32 %v2217_v34 }
0x1589   :  { %2631 = vtanh.f32 %v1086_v33 }
0x1595   :  { %v2630_v36 = vpop.eup %2629 }
0x1596   :  { %v1090_v37 = vadd.f32 1.0, %v2630_v36  ;;  %v2632_v38 = vpop.eup %2631 }
0x1598   :  { %2633 = vrcp.f32 %v1090_v37 }
0x15a5   :  { %v2634_v39 = vpop.eup %2633 }
0x15a6   :  { %v1094_v40 = vsel %vm2947_vm8, %v2632_v38, %v2634_v39 }
0x15a7   :  { %1100 = vrot.lane.b32.xlu0 %v1094_v40, %s2705_s4  ;;  %v1098_v43 = vmul.f32 %v1096_v58, %v1094_v40 }
0x1619   :  { %v1101_v41 = vpop.permute.xlu0 %1100 }
0x161a   :  { %v1103_v42 = vmul.f32 %v1101_v41, %v1094_v40 }
0x161c   :  { %1105 = vrot.lane.b32.xlu1 %v1103_v42, %s2706_s0 }
0x1620   :  { %1141 = vrot.lane.b32.xlu1 %v3017_v24, %s2706_s0  ;;  %v3091_v24 = vld [vmem:[%s3335_s6 + $0x18] sm:$0xff] }
0x1621   :  { %2479 = vmatpush3.msra.mxu0 %v3091_v24 }
0x1622   :  { %2480 = vmatprep.subr.mxu0 %v2703_v45 }
0x1623   :  { %2481 = vmatpush3.msra.mxu0 %v3097_v53 }
0x1624   :  { %2482 = vmatprep.subr.mxu0 %v2703_v45 }
0x1625   :  { %2483 = vmatpush3.msra.mxu0 %v3106_v55 }
0x1626   :  { %2484 = vmatprep.subr.mxu0 %v2703_v45 }
0x1627   :  { %2485 = vmatpush3.msra.mxu0 %v3120_v57 }
0x1628   :  { %2487 = vmatmul.mubr.f32.vlgmr.msra.gmra.mxu0 %v2703_v45  ;;  %2500 = vmatprep.subr.mxu0 %v2703_v45 }
0x1629   :  { %2501 = vmatpush3.msra.mxu0 %v3091_v24  ;;  %2508 = vmatprep.mubr.msk.f32.mxu0 %vm2704_vm4, %v2703_v45 }
0x162a   :  { %2502 = vmatprep.subr.mxu0 %v2703_v45 }
0x162b   :  { %2503 = vmatpush3.msra.mxu0 %v3097_v53 }
0x162c   :  { %2504 = vmatprep.subr.mxu0 %v2703_v45 }
0x162d   :  { %2505 = vmatpush3.msra.mxu0 %v3106_v55 }
0x162e   :  { %2506 = vmatprep.subr.mxu0 %v2703_v45 }
0x162f   :  { %2507 = vmatpush3.msra.mxu0 %v3120_v57 }
0x1630   :  { %2522 = vmatprep.subr.mxu0 %v2703_v45 }
0x168e   :  { %v1106_v44 = vpop.permute.xlu1 %1105 }
0x168f   :  { %v1108_v50 = vadd.f32 %v1106_v44, %v1098_v43 }
0x1691   :  { %2635 = vtanh.f32 %v1108_v50 }
0x1692   :  { %v1142_v51 = vpop.permute.xlu1 %1141 }
0x1693   :  { %2475 = vmatprep.mubr.msk.f32.mxu1 %vm183_vm5, %v1142_v51 }
0x169e   :  { %v2636_v47 = vpop.eup %2635 }
0x169f   :  { %1111 = vrot.lane.b32.xlu0 %v2636_v47, %s2705_s4 }
0x16e8   :  { %v1290_v62 = vpop.f32.mrf.mxu0 }
0x16ea   :  { %v2488_v63 = vpop.f32.mrf.mxu0 }
0x1711   :  { %v1112_v48 = vpop.permute.xlu0 %1111 }
0x1712   :  { %v1114_v49 = vmul.f32 %v1112_v48, %v1094_v40 }
0x1714   :  { %v1123_v59 = vsel %vm1119_vm11, %v3068_v28, %v1114_v49 }
0x1715   :  { %1143 = vrot.lane.b32.xlu0 %v1123_v59, %s2706_s0 }
0x1787   :  { %v1144_v61 = vpop.permute.xlu0 %1143 }
0x1788   :  { %2476 = vmatmul.mubr.msk.f32.vlgmr.msra.gmra.mxu1 %vm183_vm5, %v1144_v61 }
0x1789   :  { %2490 = vmatpush3.msra.mxu1 %v3091_v24  ;;  %2497 = vmatprep.mubr.msk.f32.mxu1 %vm2704_vm4, %v2703_v45 }
0x178a   :  { %2491 = vmatprep.subr.mxu1 %v2703_v45 }
0x178b   :  { %2492 = vmatpush3.msra.mxu1 %v3097_v53 }
0x178c   :  { %2493 = vmatprep.subr.mxu1 %v2703_v45 }
0x178d   :  { %2494 = vmatpush3.msra.mxu1 %v3106_v55 }
0x178e   :  { %2495 = vmatprep.subr.mxu1 %v2703_v45 }
0x178f   :  { %2496 = vmatpush3.msra.mxu1 %v3120_v57 }
0x1790   :  { %2511 = vmatprep.subr.mxu1 %v2703_v45 }
0x1848   :  { %v2477_v1 = vpop.f32.mrf.mxu1 }
0x1849   :  { %v3152_v2 = vadd.f32 %v2477_v1, %v2218_v0 }
0x184a   :  { %v1215_v4 = vpop.f32.mrf.mxu1 }
0x184b   :  { %v3154_v5 = vadd.f32 %v2218_v0, %v1215_v4 }
0x184d   :  { %v1294_v6 = vadd.f32 %v1290_v62, %v3154_v5 }
0x184f   :  { %v2221_v7 = vmul.f32 -1.442695, %v1294_v6 }
0x1851   :  { %2637 = vpow2.f32 %v2221_v7 }
0x1852   :  { %2639 = vtanh.f32 %v1294_v6 }
0x185e   :  { %v2638_v8 = vpop.eup %2637 }
0x185f   :  { %v1298_v9 = vadd.f32 1.0, %v2638_v8  ;;  %v2640_v10 = vpop.eup %2639 }
0x1861   :  { %2641 = vrcp.f32 %v1298_v9 }
0x186e   :  { %v2642_v11 = vpop.eup %2641 }
0x186f   :  { %v1302_v12 = vsel %vm2947_vm8, %v2640_v10, %v2642_v11 }
0x1870   :  { %1305 = vrot.lane.b32.xlu1 %v1302_v12, %s2705_s4  ;;  %v1303_v15 = vmul.f32 0.0, %v1302_v12 }
0x18e2   :  { %v1306_v13 = vpop.permute.xlu1 %1305 }
0x18e3   :  { %v1308_v14 = vmul.f32 %v1306_v13, %v1302_v12 }
0x18e5   :  { %1310 = vrot.lane.b32.xlu0 %v1308_v14, %s2706_s0 }
0x1957   :  { %v1311_v16 = vpop.permute.xlu0 %1310 }
0x1958   :  { %v1313_v17 = vadd.f32 %v1311_v16, %v1303_v15 }
0x195a   :  { %2643 = vtanh.f32 %v1313_v17  ;;  %v1408_v34 = vrot.slane %v1313_v17, 6 }
0x1967   :  { %v2644_v18 = vpop.eup %2643 }
0x1968   :  { %1316 = vrot.lane.b32.xlu1 %v2644_v18, %s2705_s4 }
0x19da   :  { %v1317_v60 = vpop.permute.xlu1 %1316 }
0x19db   :  { %v3162_v19 = vmul.f32 %v1317_v60, %v1302_v12 }
0x19dd   :  { %1321 = vrot.lane.b32.xlu0 %v3162_v19, %s2706_s0 }
0x1a4f   :  { %v1322_v20 = vpop.permute.xlu0 %1321 }
0x1a50   :  { %2498 = vmatmul.mubr.msk.f32.vlgmr.msra.gmra.mxu1 %vm183_vm5, %v1322_v20 }
0x1a51   :  { %2512 = vmatpush3.msra.mxu1 %v3091_v24  ;;  %2519 = vmatprep.mubr.msk.f32.mxu1 %vm2704_vm4, %v2703_v45 }
0x1a52   :  { %2513 = vmatprep.subr.mxu1 %v2703_v45 }
0x1a53   :  { %2514 = vmatpush3.msra.mxu1 %v3097_v53 }
0x1a54   :  { %2515 = vmatprep.subr.mxu1 %v2703_v45 }
0x1a55   :  { %2516 = vmatpush3.msra.mxu1 %v3106_v55 }
0x1a56   :  { %2517 = vmatprep.subr.mxu1 %v2703_v45 }
0x1a57   :  { %2518 = vmatpush3.msra.mxu1 %v3120_v57 }
0x1a58   :  { %2533 = vmatprep.subr.mxu1 %v2703_v45 }
0x1b10   :  { %v1391_v21 = vpop.f32.mrf.mxu1 }
0x1b11   :  { %v1396_v22 = vrot.slane %v1391_v21, 6 }
0x1b12   :  { %v2499_v23 = vpop.f32.mrf.mxu1 }
0x1b13   :  { %v1398_v25 = vadd.f32 %v1396_v22, %v3154_v5 }
0x1b15   :  { %v2223_v26 = vmul.f32 -1.442695, %v1398_v25 }
0x1b17   :  { %2645 = vpow2.f32 %v2223_v26 }
0x1b18   :  { %2647 = vtanh.f32 %v1398_v25 }
0x1b24   :  { %v2646_v27 = vpop.eup %2645 }
0x1b25   :  { %v1402_v28 = vadd.f32 1.0, %v2646_v27  ;;  %v2648_v29 = vpop.eup %2647 }
0x1b27   :  { %2649 = vrcp.f32 %v1402_v28 }
0x1b34   :  { %v2650_v30 = vpop.eup %2649 }
0x1b35   :  { %v1406_v31 = vsel %vm2947_vm8, %v2648_v29, %v2650_v30 }
0x1b36   :  { %1412 = vrot.lane.b32.xlu1 %v1406_v31, %s2705_s4  ;;  %v1410_v36 = vmul.f32 %v1408_v34, %v1406_v31 }
0x1ba8   :  { %v1413_v32 = vpop.permute.xlu1 %1412 }
0x1ba9   :  { %v1415_v33 = vmul.f32 %v1413_v32, %v1406_v31 }
0x1bab   :  { %1417 = vrot.lane.b32.xlu0 %v1415_v33, %s2706_s0 }
0x1c1d   :  { %v1418_v37 = vpop.permute.xlu0 %1417 }
0x1c1e   :  { %v1420_v38 = vadd.f32 %v1418_v37, %v1410_v36 }
0x1c20   :  { %2651 = vtanh.f32 %v1420_v38  ;;  %v1516_v61 = vrot.slane %v1420_v38, 6 }
0x1c2d   :  { %v2652_v39 = vpop.eup %2651 }
0x1c2e   :  { %1423 = vrot.lane.b32.xlu1 %v2652_v39, %s2705_s4 }
0x1ca0   :  { %v1424_v40 = vpop.permute.xlu1 %1423 }
0x1ca1   :  { %v1426_v41 = vmul.f32 %v1424_v40, %v1406_v31 }
0x1ca3   :  { %v1428_v42 = vrot.slane %v1426_v41, 2  ;;  %v2071_v7 = vsel %vm1115_vm9, %v3162_v19, %v1426_v41 }
0x1ca5   :  { %1429 = vrot.lane.b32.xlu0 %v1428_v42, %s2706_s0 }
0x1d17   :  { %v1430_v58 = vpop.permute.xlu0 %1429 }
0x1d18   :  { %2509 = vmatmul.mubr.msk.f32.vlgmr.msra.gmra.mxu0 %vm183_vm5, %v1430_v58 }
0x1d19   :  { %2523 = vmatpush3.msra.mxu0 %v3091_v24  ;;  %2530 = vmatprep.mubr.msk.f32.mxu0 %vm2704_vm4, %v2703_v45 }
0x1d1a   :  { %2524 = vmatprep.subr.mxu0 %v2703_v45 }
0x1d1b   :  { %2525 = vmatpush3.msra.mxu0 %v3097_v53 }
0x1d1c   :  { %2526 = vmatprep.subr.mxu0 %v2703_v45 }
0x1d1d   :  { %2527 = vmatpush3.msra.mxu0 %v3106_v55 }
0x1d1e   :  { %2528 = vmatprep.subr.mxu0 %v2703_v45 }
0x1d1f   :  { %2529 = vmatpush3.msra.mxu0 %v3120_v57 }
0x1d20   :  { %2544 = vmatprep.subr.mxu0 %v2703_v45 }
0x1dd8   :  { %v1499_v43 = vpop.f32.mrf.mxu0 }
0x1dd9   :  { %v1504_v44 = vrot.slane %v1499_v43, 4 }
0x1dda   :  { %v2510_v50 = vpop.f32.mrf.mxu0 }
0x1ddb   :  { %v1506_v51 = vadd.f32 %v1504_v44, %v3154_v5 }
0x1ddd   :  { %v2225_v52 = vmul.f32 -1.442695, %v1506_v51 }
0x1ddf   :  { %2653 = vpow2.f32 %v2225_v52 }
0x1de0   :  { %2655 = vtanh.f32 %v1506_v51 }
0x1dec   :  { %v2654_v46 = vpop.eup %2653 }
0x1ded   :  { %v1510_v54 = vadd.f32 1.0, %v2654_v46  ;;  %v2656_v56 = vpop.eup %2655 }
0x1def   :  { %2657 = vrcp.f32 %v1510_v54 }
0x1dfc   :  { %v2658_v47 = vpop.eup %2657 }
0x1dfd   :  { %v1514_v48 = vsel %vm2947_vm8, %v2656_v56, %v2658_v47 }
0x1dfe   :  { %1520 = vrot.lane.b32.xlu1 %v1514_v48, %s2705_s4  ;;  %v1518_v62 = vmul.f32 %v1516_v61, %v1514_v48 }
0x1e70   :  { %v1521_v49 = vpop.permute.xlu1 %1520 }
0x1e71   :  { %v1523_v59 = vmul.f32 %v1521_v49, %v1514_v48 }
0x1e73   :  { %1525 = vrot.lane.b32.xlu0 %v1523_v59, %s2706_s0 }
0x1ee5   :  { %v1526_v63 = vpop.permute.xlu0 %1525 }
0x1ee6   :  { %v1528_v0 = vadd.f32 %v1526_v63, %v1518_v62 }
0x1ee8   :  { %2659 = vtanh.f32 %v1528_v0  ;;  %v1624_v22 = vrot.slane %v1528_v0, 6 }
0x1ef5   :  { %v2660_v1 = vpop.eup %2659 }
0x1ef6   :  { %1531 = vrot.lane.b32.xlu1 %v2660_v1, %s2705_s4 }
0x1f68   :  { %v1532_v4 = vpop.permute.xlu1 %1531 }
0x1f69   :  { %v1534_v6 = vmul.f32 %v1532_v4, %v1514_v48 }
0x1f6b   :  { %v1536_v8 = vrot.slane %v1534_v6, 4  ;;  %v2072_v9 = vsel %vm1117_vm10, %v2071_v7, %v1534_v6 }
0x1f6d   :  { %1537 = vrot.lane.b32.xlu0 %v1536_v8, %s2706_s0 }
0x1fdf   :  { %v1538_v10 = vpop.permute.xlu0 %1537 }
0x1fe0   :  { %2520 = vmatmul.mubr.msk.f32.vlgmr.msra.gmra.mxu1 %vm183_vm5, %v1538_v10 }
0x1fe1   :  { %2534 = vmatpush3.msra.mxu1 %v3091_v24  ;;  %2541 = vmatprep.mubr.msk.f32.mxu1 %vm2704_vm4, %v2703_v45 }
0x1fe2   :  { %2535 = vmatprep.subr.mxu1 %v2703_v45 }
0x1fe3   :  { %2536 = vmatpush3.msra.mxu1 %v3097_v53 }
0x1fe4   :  { %2537 = vmatprep.subr.mxu1 %v2703_v45 }
0x1fe5   :  { %2538 = vmatpush3.msra.mxu1 %v3106_v55 }
0x1fe6   :  { %2539 = vmatprep.subr.mxu1 %v2703_v45 }
0x1fe7   :  { %2540 = vmatpush3.msra.mxu1 %v3120_v57 }
0x1fe8   :  { %2555 = vmatprep.subr.mxu1 %v2703_v45 }
0x20a0   :  { %v1607_v11 = vpop.f32.mrf.mxu1 }
0x20a1   :  { %v1612_v12 = vrot.slane %v1607_v11, 2 }
0x20a2   :  { %v2521_v13 = vpop.f32.mrf.mxu1 }
0x20a3   :  { %v1614_v14 = vadd.f32 %v1612_v12, %v3154_v5 }
0x20a5   :  { %v2227_v15 = vmul.f32 -1.442695, %v1614_v14 }
0x20a7   :  { %2661 = vpow2.f32 %v2227_v15 }
0x20a8   :  { %2663 = vtanh.f32 %v1614_v14 }
0x20b4   :  { %v2662_v16 = vpop.eup %2661 }
0x20b5   :  { %v1618_v17 = vadd.f32 1.0, %v2662_v16  ;;  %v2664_v18 = vpop.eup %2663 }
0x20b7   :  { %2665 = vrcp.f32 %v1618_v17 }
0x20c4   :  { %v2666_v60 = vpop.eup %2665 }
0x20c5   :  { %v1622_v19 = vsel %vm2947_vm8, %v2664_v18, %v2666_v60 }
0x20c6   :  { %1628 = vrot.lane.b32.xlu1 %v1622_v19, %s2705_s4  ;;  %v1626_v23 = vmul.f32 %v1624_v22, %v1622_v19 }
0x2138   :  { %v1629_v20 = vpop.permute.xlu1 %1628 }
0x2139   :  { %v1631_v21 = vmul.f32 %v1629_v20, %v1622_v19 }
0x213b   :  { %1633 = vrot.lane.b32.xlu0 %v1631_v21, %s2706_s0 }
0x21ad   :  { %v1634_v5 = vpop.permute.xlu0 %1633 }
0x21ae   :  { %v1636_v25 = vadd.f32 %v1634_v5, %v1626_v23 }
0x21b0   :  { %2667 = vtanh.f32 %v1636_v25  ;;  %v1729_v43 = vrot.slane %v1636_v25, 6 }
0x21bd   :  { %v2668_v26 = vpop.eup %2667 }
0x21be   :  { %1639 = vrot.lane.b32.xlu1 %v2668_v26, %s2705_s4 }
0x2230   :  { %v1640_v27 = vpop.permute.xlu1 %1639 }
0x2231   :  { %v1642_v28 = vmul.f32 %v1640_v27, %v1622_v19 }
0x2233   :  { %v1644_v29 = vrot.slane %v1642_v28, 6  ;;  %v3223_v30 = vsel %vm1119_vm11, %v2072_v9, %v1642_v28 }
0x2235   :  { %1645 = vrot.lane.b32.xlu0 %v1644_v29, %s2706_s0 }
0x22a7   :  { %v1646_v31 = vpop.permute.xlu0 %1645 }
0x22a8   :  { %2531 = vmatmul.mubr.msk.f32.vlgmr.msra.gmra.mxu0 %vm183_vm5, %v1646_v31 }
0x22a9   :  { %2545 = vmatpush3.msra.mxu0 %v3091_v24  ;;  %2552 = vmatprep.mubr.msk.f32.mxu0 %vm2704_vm4, %v2703_v45 }
0x22aa   :  { %2546 = vmatprep.subr.mxu0 %v2703_v45 }
0x22ab   :  { %2547 = vmatpush3.msra.mxu0 %v3097_v53 }
0x22ac   :  { %2548 = vmatprep.subr.mxu0 %v2703_v45 }
0x22ad   :  { %2549 = vmatpush3.msra.mxu0 %v3106_v55 }
0x22ae   :  { %2550 = vmatprep.subr.mxu0 %v2703_v45 }
0x22af   :  { %2551 = vmatpush3.msra.mxu0 %v3120_v57 }
0x2368   :  { %v1715_v32 = vpop.f32.mrf.mxu0 }
0x2369   :  { %v1719_v33 = vadd.f32 %v1715_v32, %v3152_v2 }
0x236a   :  { %v2532_v34 = vpop.f32.mrf.mxu0 }
0x236b   :  { %v2229_v36 = vmul.f32 -1.442695, %v1719_v33 }
0x236d   :  { %2669 = vpow2.f32 %v2229_v36 }
0x236e   :  { %2671 = vtanh.f32 %v1719_v33 }
0x237a   :  { %v2670_v37 = vpop.eup %2669 }
0x237b   :  { %v1723_v38 = vadd.f32 1.0, %v2670_v37  ;;  %v2672_v39 = vpop.eup %2671 }
0x237d   :  { %2673 = vrcp.f32 %v1723_v38 }
0x238a   :  { %v2674_v40 = vpop.eup %2673 }
0x238b   :  { %v1727_v41 = vsel %vm2947_vm8, %v2672_v39, %v2674_v40 }
0x238c   :  { %1733 = vrot.lane.b32.xlu1 %v1727_v41, %s2705_s4  ;;  %v1731_v44 = vmul.f32 %v1729_v43, %v1727_v41  ;;  %v2084_v43 = vld [vmem:[%s3337_s8 + $0x38] sm:$0xff] }
0x238d   :  { %2131 = vmatprep.subr.mxu0 %v2084_v43 }
0x23fe   :  { %v1734_v42 = vpop.permute.xlu1 %1733 }
0x23ff   :  { %v1736_v58 = vmul.f32 %v1734_v42, %v1727_v41 }
0x2401   :  { %1738 = vrot.lane.b32.xlu0 %v1736_v58, %s2706_s0 }
0x2473   :  { %v1739_v50 = vpop.permute.xlu0 %1738 }
0x2474   :  { %v1741_v51 = vadd.f32 %v1739_v50, %v1731_v44  ;;  %v2083_v44 = vld [vmem:[%s3337_s8 + $0x30] sm:$0xff]  ;;  %v2082_v50 = vld [vmem:[%s3337_s8 + $0x28] sm:$0xff] }
0x2476   :  { %2675 = vtanh.f32 %v1741_v51  ;;  %v1836_v1 = vrot.slane %v1741_v51, 6 }
0x2483   :  { %v2676_v52 = vpop.eup %2675 }
0x2484   :  { %1744 = vrot.lane.b32.xlu1 %v2676_v52, %s2705_s4 }
0x24f6   :  { %v1745_v46 = vpop.permute.xlu1 %1744 }
0x24f7   :  { %v3242_v54 = vmul.f32 %v1745_v46, %v1727_v41 }
0x24f9   :  { %1749 = vrot.lane.b32.xlu0 %v3242_v54, %s2706_s0 }
0x256b   :  { %v1750_v56 = vpop.permute.xlu0 %1749 }
0x256c   :  { %2542 = vmatmul.mubr.msk.f32.vlgmr.msra.gmra.mxu1 %vm183_vm5, %v1750_v56  ;;  %v2079_v56 = vld [vmem:[%s3337_s8 + $0x10] sm:$0xff] }
0x256d   :  { %2556 = vmatpush3.msra.mxu1 %v3091_v24  ;;  %2563 = vmatprep.mubr.msk.f32.mxu1 %vm2704_vm4, %v2703_v45 }
0x256e   :  { %2557 = vmatprep.subr.mxu1 %v2703_v45 }
0x256f   :  { %2558 = vmatpush3.msra.mxu1 %v3097_v53 }
0x2570   :  { %2559 = vmatprep.subr.mxu1 %v2703_v45 }
0x2571   :  { %2560 = vmatpush3.msra.mxu1 %v3106_v55 }
0x2572   :  { %2561 = vmatprep.subr.mxu1 %v2703_v45 }
0x2573   :  { %2562 = vmatpush3.msra.mxu1 %v3120_v57 }
0x262c   :  { %v1819_v47 = vpop.f32.mrf.mxu1 }
0x262d   :  { %v1824_v48 = vrot.slane %v1819_v47, 6  ;;  %v2078_v47 = vld [vmem:[%s3337_s8 + $0x8] sm:$0xff] }
0x262e   :  { %v2543_v49 = vpop.f32.mrf.mxu1 }
0x262f   :  { %v1826_v24 = vadd.f32 %v1824_v48, %v3152_v2 }
0x2631   :  { %v2231_v59 = vmul.f32 -1.442695, %v1826_v24 }
0x2633   :  { %2677 = vpow2.f32 %v2231_v59 }
0x2634   :  { %2679 = vtanh.f32 %v1826_v24 }
0x2640   :  { %v2678_v61 = vpop.eup %2677 }
0x2641   :  { %v1830_v62 = vadd.f32 1.0, %v2678_v61  ;;  %v2680_v53 = vpop.eup %2679 }
0x2643   :  { %2681 = vrcp.f32 %v1830_v62 }
0x2650   :  { %v2682_v63 = vpop.eup %2681 }
0x2651   :  { %v1834_v55 = vsel %vm2947_vm8, %v2680_v53, %v2682_v63 }
0x2652   :  { %1840 = vrot.lane.b32.xlu1 %v1834_v55, %s2705_s4  ;;  %v1838_v4 = vmul.f32 %v1836_v1, %v1834_v55 }
0x26c4   :  { %v1841_v0 = vpop.permute.xlu1 %1840 }
0x26c5   :  { %v1843_v57 = vmul.f32 %v1841_v0, %v1834_v55 }
0x26c7   :  { %1845 = vrot.lane.b32.xlu0 %v1843_v57, %s2706_s0 }
0x2739   :  { %v1846_v6 = vpop.permute.xlu0 %1845 }
0x273a   :  { %v1848_v7 = vadd.f32 %v1846_v6, %v1838_v4  ;;  %v2085_v4 = vld [vmem:[%s3338_s9] sm:$0x3] }
0x273c   :  { %2683 = vtanh.f32 %v1848_v7  ;;  %v1944_v5 = vrot.slane %v1848_v7, 6 }
0x2749   :  { %v2684_v8 = vpop.eup %2683 }
0x274a   :  { %1851 = vrot.lane.b32.xlu1 %v2684_v8, %s2705_s4 }
0x27bc   :  { %v1852_v9 = vpop.permute.xlu1 %1851 }
0x27bd   :  { %v1854_v10 = vmul.f32 %v1852_v9, %v1834_v55 }
0x27bf   :  { %v1856_v11 = vrot.slane %v1854_v10, 2  ;;  %v2074_v32 = vsel %vm1115_vm9, %v3242_v54, %v1854_v10  ;;  %v2080_v54 = vld [vmem:[%s3337_s8 + $0x18] sm:$0xff] }
0x27c1   :  { %1857 = vrot.lane.b32.xlu0 %v1856_v11, %s2706_s0 }
0x2833   :  { %v1858_v12 = vpop.permute.xlu0 %1857 }
0x2834   :  { %2553 = vmatmul.mubr.msk.f32.vlgmr.msra.gmra.mxu0 %vm183_vm5, %v1858_v12 }
0x2835   :  { %2171 = vmatprep.mubr.f32.mxu0 %v2703_v45  ;;  %2132 = vmatpush1.msra.mxu0 %v2083_v44 }
0x2836   :  { %2133 = vmatprep.subr.mxu0 %v2082_v50 }
0x28f4   :  { %v1927_v13 = vpop.f32.mrf.mxu0 }
0x28f5   :  { %v1932_v14 = vrot.slane %v1927_v13, 4 }
0x28f6   :  { %v2554_v15 = vpop.f32.mrf.mxu0 }
0x28f7   :  { %v1934_v16 = vadd.f32 %v1932_v14, %v3152_v2 }
0x28f9   :  { %v2233_v17 = vmul.f32 -1.442695, %v1934_v16 }
0x28fb   :  { %2685 = vpow2.f32 %v2233_v17 }
0x28fc   :  { %2687 = vtanh.f32 %v1934_v16 }
0x2908   :  { %v2686_v18 = vpop.eup %2685 }
0x2909   :  { %v1938_v60 = vadd.f32 1.0, %v2686_v18  ;;  %v2688_v19 = vpop.eup %2687 }
0x290b   :  { %2689 = vrcp.f32 %v1938_v60 }
0x2918   :  { %v2690_v20 = vpop.eup %2689 }
0x2919   :  { %v1942_v21 = vsel %vm2947_vm8, %v2688_v19, %v2690_v20 }
0x291a   :  { %1948 = vrot.lane.b32.xlu1 %v1942_v21, %s2705_s4  ;;  %v1946_v25 = vmul.f32 %v1944_v5, %v1942_v21 }
0x298c   :  { %v1949_v22 = vpop.permute.xlu1 %1948 }
0x298d   :  { %v1951_v23 = vmul.f32 %v1949_v22, %v1942_v21 }
0x298f   :  { %1953 = vrot.lane.b32.xlu0 %v1951_v23, %s2706_s0 }
0x2a01   :  { %v1954_v26 = vpop.permute.xlu0 %1953 }
0x2a02   :  { %v1956_v27 = vadd.f32 %v1954_v26, %v1946_v25 }
0x2a04   :  { %2691 = vtanh.f32 %v1956_v27  ;;  %v2052_v24 = vrot.slane %v1956_v27, 6 }
0x2a11   :  { %v2692_v28 = vpop.eup %2691 }
0x2a12   :  { %1959 = vrot.lane.b32.xlu1 %v2692_v28, %s2705_s4 }
0x2a84   :  { %v1960_v29 = vpop.permute.xlu1 %1959 }
0x2a85   :  { %v1962_v31 = vmul.f32 %v1960_v29, %v1942_v21 }
0x2a87   :  { %v1964_v33 = vrot.slane %v1962_v31, 4  ;;  %v2075_v34 = vsel %vm1117_vm10, %v2074_v32, %v1962_v31 }
0x2a89   :  { %1965 = vrot.lane.b32.xlu0 %v1964_v33, %s2706_s0 }
0x2afb   :  { %v1966_v36 = vpop.permute.xlu0 %1965 }
0x2afc   :  { %2564 = vmatmul.mubr.msk.f32.vlgmr.msra.gmra.mxu1 %vm183_vm5, %v1966_v36 }
0x2bbc   :  { %v2035_v37 = vpop.f32.mrf.mxu1 }
0x2bbd   :  { %v2040_v38 = vrot.slane %v2035_v37, 2 }
0x2bbe   :  { %v2565_v39 = vpop.f32.mrf.mxu1 }
0x2bbf   :  { %v2042_v40 = vadd.f32 %v2040_v38, %v3152_v2  ;;  %v2081_v2 = vld [vmem:[%s3337_s8 + $0x20] sm:$0xff] }
0x2bc0   :  { %2134 = vmatpush1.msra.mxu0 %v2081_v2 }
0x2bc1   :  { %v2235_v41 = vmul.f32 -1.442695, %v2042_v40  ;;  %2135 = vmatprep.subr.mxu0 %v2080_v54 }
0x2bc2   :  { %2136 = vmatpush1.msra.mxu0 %v2079_v56 }
0x2bc3   :  { %2693 = vpow2.f32 %v2235_v41  ;;  %2137 = vmatprep.subr.mxu0 %v2078_v47 }
0x2bc4   :  { %2695 = vtanh.f32 %v2042_v40  ;;  %2138 = vmatpush1.msra.mxu0 %v2077_v3 }
0x2bd0   :  { %v2694_v42 = vpop.eup %2693 }
0x2bd1   :  { %v2046_v58 = vadd.f32 1.0, %v2694_v42  ;;  %v2696_v51 = vpop.eup %2695 }
0x2bd3   :  { %2697 = vrcp.f32 %v2046_v58 }
0x2be0   :  { %v2698_v52 = vpop.eup %2697 }
0x2be1   :  { %v2050_v46 = vsel %vm2947_vm8, %v2696_v51, %v2698_v52 }
0x2be2   :  { %2056 = vrot.lane.b32.xlu1 %v2050_v46, %s2705_s4  ;;  %v2054_v59 = vmul.f32 %v2052_v24, %v2050_v46 }
0x2c54   :  { %v2057_v48 = vpop.permute.xlu1 %2056 }
0x2c55   :  { %v2059_v49 = vmul.f32 %v2057_v48, %v2050_v46 }
0x2c57   :  { %2061 = vrot.lane.b32.xlu0 %v2059_v49, %s2706_s0 }
0x2c5b   :  { %2099 = vrot.lane.b32.xlu0 %v3223_v30, %s2706_s0  ;;  %v2088_v30 = vshrl.u32 %v37_v35, 7 }
0x2c5d   :  { %v2089_v1 = vsub.s32 0, %v2088_v30  ;;  %v2093_v6 = vsub.s32 1, %v2088_v30 }
0x2c5f   :  { %v2090_v7 = vrot.slane %v2085_v4, %v2089_v1  ;;  %v2094_v8 = vrot.slane %v2085_v4, %v2093_v6 }
0x2cc9   :  { %v2062_v61 = vpop.permute.xlu0 %2061 }
0x2cca   :  { %v2064_v62 = vadd.f32 %v2062_v61, %v2054_v59 }
0x2ccc   :  { %2699 = vtanh.f32 %v2064_v62 }
0x2ccd   :  { %v2100_v53 = vpop.permute.xlu0 %2099 }
0x2cce   :  { %2236 = vmatmul.mubr.msk.f32.vlgmr.msra.gmra.mxu0 %vm183_vm5, %v2100_v53 }
0x2ccf   :  { %2177 = vmatprep.mubr.f32.mxu0 %v2703_v45 }
0x2cd9   :  { %v2700_v63 = vpop.eup %2699 }
0x2cda   :  { %2067 = vrot.lane.b32.xlu1 %v2700_v63, %s2705_s4 }
0x2d4c   :  { %v2068_v55 = vpop.permute.xlu1 %2067 }
0x2d4d   :  { %v2070_v0 = vmul.f32 %v2068_v55, %v2050_v46 }
0x2d4f   :  { %v2076_v57 = vsel %vm1119_vm11, %v2075_v34, %v2070_v0 }
0x2d50   :  { %2101 = vrot.lane.b32.xlu1 %v2076_v57, %s2706_s0 }
0x2d8e   :  { %v2173_v45 = vpop.f32.mrf.mxu0 }
0x2d8f   :  { %v2174_v9 = vadd.f32 %v2173_v45, %v2090_v7 }
0x2d90   :  { %v2175_v10 = vpop.f32.mrf.mxu0 }
0x2d91   :  { %2184 = vst [vmem:[%s3339_s10] sm:$0xff] %v2174_v9  ;;  %v2176_v11 = vadd.f32 %v2175_v10, %v2094_v8 }
0x2d93   :  { %2185 = vst [vmem:[%s3339_s10 + $0x8] sm:$0xff] %v2176_v11 }
0x2dc2   :  { %v2102_v35 = vpop.permute.xlu1 %2101 }
0x2dc3   :  { %2237 = vmatmul.mubr.msk.f32.gmra.mxu0 %vm183_vm5, %v2102_v35 }
0x2e83   :  { %v2179_v12 = vpop.f32.mrf.mxu0 }
0x2e84   :  { %v2180_v13 = vadd.f32 %v2179_v12, %v2090_v7 }
0x2e85   :  { %v2181_v14 = vpop.f32.mrf.mxu0 }
0x2e86   :  { %2186 = vst [vmem:[%s3339_s10 + $0x10] sm:$0xff] %v2180_v13  ;;  %v2182_v15 = vadd.f32 %v2181_v14, %v2094_v8 }
0x2e88   :  { %2187 = vst [vmem:[%s3339_s10 + $0x18] sm:$0xff] %v2182_v15 }

</bundles_post_ra>
